<compile_context>
chip_gen: v5e
topology: v5e:2x2
jax: 0.10.0
libtpu: 0.0.40
codegen_flags: <defaults>
</compile_context>

<pallas_src>
import functools
import numpy as np
import jax
import jax.numpy as jnp
from jax.experimental import pallas as pl
from jax.experimental.pallas import tpu as pltpu

# ---------------- configuration (matches SSLSchNetModel defaults) -------------
DIM = 64                                    # feature dim
CUTOFF = 5.0
WIDTH = 0.1
N_CONV = 3
N_CENTERS = int(np.ceil(CUTOFF / WIDTH))    # 50 == rbf fan_out == edge_mask size
N_CENTERS_PAD = 64                          # padded contraction dim for the MXU
LANES = N_CONV * DIM                        # 192: lane width of both input slabs
HEAD_NODE_H = 32                            # node_type_layer1: Linear(64, 32)
HEAD_NODE_O = 3                             # node_type_layer2: Linear(32, 3)
HEAD_EDGE_H = 64                            # edge_type_layer1: Linear(128, 64)
HEAD_EDGE_O = 5                             # edge_type_layer2: Linear(64, 5)
HEAD_PAD = 128                              # lane-dense head output width

SP_BETA = 0.5                               # nn.Softplus(beta=0.5, threshold=14)
SP_THRESH = 14.0


def _softplus05(x):
    bx = SP_BETA * x
    return jnp.where(bx > SP_THRESH, x,
                     (1.0 / SP_BETA) * jnp.log1p(jnp.exp(jnp.minimum(bx, SP_THRESH))))


# ------------------------- slab layouts (static offsets) ----------------------
def _aligned_layout(sections, align):
    lay, cur = {}, 0
    for name, rows in sections:
        cur = -(-cur // align) * align
        lay[name] = cur
        cur += rows
    lay["_rows"] = -(-cur // align) * align
    return lay


def f32_layout(n, e, nn, ne):
    # f32 sublane tile = 8 rows
    return _aligned_layout([
        ("node0", n), ("radial", e), ("rbfovr", e), ("bias", 4), ("headb", 2),
        ("seln", nn), ("sels", ne), ("selt", ne), ("wnt", DIM), ("wet", 2 * DIM),
    ], align=8)


def bf16_layout(n, e):
    # bf16 sublane tile = 16 rows
    return _aligned_layout([
        ("cfw1", N_CENTERS_PAD), ("cfw2", N_CONV * DIM), ("convw", N_CONV * DIM),
        ("src", e), ("dstt", n),
    ], align=16)


# ------------------------------- Pallas kernel --------------------------------
def schnet_kernel(fslab_ref, bslab_ref, node_type_ref, edge_type_ref,
                  *, coef, n, e, nn, ne, lf, lb):
    bf16 = jnp.bfloat16
    dot = functools.partial(jnp.dot, preferred_element_type=jnp.float32)

    # --- RBF layer: lane-dense operands, masked edges / padded centers are
    #     pre-gated in the wrapper so exp underflows to exactly 0 and the
    #     learned edge_mask comes back through the additive override.
    radial = fslab_ref[lf["radial"]:lf["radial"] + e, 0:N_CENTERS_PAD]   # (E, 64)
    rbf_ovr = fslab_ref[lf["rbfovr"]:lf["rbfovr"] + e, 0:N_CENTERS_PAD]  # (E, 64)
    rbf = jnp.exp(coef * radial * radial) + rbf_ovr                      # (E, 64) f32

    biases = fslab_ref[lf["bias"]:lf["bias"] + 4, :]                     # (4, 3D) f32

    # --- CFConv linear1 + linear2 for all 3 layers, hoisted out of the loop ---
    cfW1 = bslab_ref[lb["cfw1"]:lb["cfw1"] + N_CENTERS_PAD, :]           # (64, 3D) bf16
    cfW2 = bslab_ref[lb["cfw2"]:lb["cfw2"] + N_CONV * DIM, :]            # (3D, 3D) block-diag
    h1 = _softplus05(dot(rbf.astype(bf16), cfW1) + biases[0:1, :])       # (E, 3D) f32
    h2 = (dot(h1.astype(bf16), cfW2) + biases[1:2, :]).astype(bf16)      # (E, 3D) bf16

    # dense one-hot incidence operands (toy graph only -- see TODO(synk) above)
    src_oh = bslab_ref[lb["src"]:lb["src"] + e, 0:n]                     # (E, N) bf16
    dstT = bslab_ref[lb["dstt"]:lb["dstt"] + n, 0:e]                     # (N, E) bf16

    node = fslab_ref[lf["node0"]:lf["node0"] + n, 0:DIM]                 # (N, D) f32

    # --- n_conv Interaction layers (CFConv + residual MLP), serial chain ---
    for l in range(N_CONV):
        r0 = lb["convw"] + l * DIM
        W1 = bslab_ref[r0:r0 + DIM, 0:DIM]                               # node_layer1
        W2 = bslab_ref[r0:r0 + DIM, DIM:2 * DIM]                         # node_layer2
        W3 = bslab_ref[r0:r0 + DIM, 2 * DIM:3 * DIM]                     # node_layer3
        lo = l * DIM
        new_node = dot(node.astype(bf16), W1).astype(bf16)               # (N, D) bf16
        gath = dot(src_oh, new_node).astype(bf16)                        # exact row gather
        msg = gath * h2[:, lo:lo + DIM]                                  # u_mul_e, bf16 VALU
        agg = dot(dstT, msg)                                             # scatter-sum, f32 acc
        cf1a = _softplus05(dot(agg.astype(bf16), W2) + biases[2:3, lo:lo + DIM])
        node = node + dot(cf1a.astype(bf16), W3) + biases[3:4, lo:lo + DIM]

    # TODO(synk): dgl.mean_nodes(g, 'node') (feature_) is computed in the torch
    # forward but never used / returned, so it is omitted here.

    # --- SSL heads: f32 selection gather + folded linears (tiny matmuls) ---
    sel_n = fslab_ref[lf["seln"]:lf["seln"] + nn, 0:n]                   # (Nn, N) f32
    sel_s = fslab_ref[lf["sels"]:lf["sels"] + ne, 0:n]
    sel_t = fslab_ref[lf["selt"]:lf["selt"] + ne, 0:n]
    W_nt = fslab_ref[lf["wnt"]:lf["wnt"] + DIM, 0:HEAD_PAD]              # (D, 128)
    W_et = fslab_ref[lf["wet"]:lf["wet"] + 2 * DIM, 0:HEAD_PAD]          # (2D, 128)
    headb = fslab_ref[lf["headb"]:lf["headb"] + 2, 0:HEAD_PAD]           # (2, 128)

    nsel = dot(sel_n, node)                                              # (Nn, D)
    ef = jnp.concatenate([dot(sel_s, node), dot(sel_t, node)], axis=1)   # (Ne, 2D)
    node_type_ref[...] = dot(nsel, W_nt) + headb[0:1, :]                 # one K=64 dot
    edge_type_ref[...] = dot(ef, W_et) + headb[1:2, :]                   # one K=128 dot


def schnet_forward(fslab, bslab, *, coef, dims, lf, lb, cost=None):
    vmem = pl.BlockSpec(memory_space=pltpu.MemorySpace.VMEM)
    nn, ne = dims["nn"], dims["ne"]
    kernel = functools.partial(schnet_kernel, coef=coef, n=dims["n"], e=dims["e"],
                               nn=nn, ne=ne, lf=lf, lb=lb)
    nt_pad, et_pad = pl.pallas_call(
        kernel,
        out_shape=(jax.ShapeDtypeStruct((nn, HEAD_PAD), jnp.float32),
                   jax.ShapeDtypeStruct((ne, HEAD_PAD), jnp.float32)),
        in_specs=[vmem, vmem],
        out_specs=(vmem, vmem),
        cost_estimate=cost,
    )(fslab, bslab)
    return nt_pad[:, :HEAD_NODE_O], et_pad[:, :HEAD_EDGE_O]


# -------------------- wrapper-side packing into 2 slabs ------------------------
def pack_slabs(params, graph):
    (emb_table, edge_mask_param, W1s, cfW1s, cfb1s, cfW2s, cfb2s, W2s, b2s, W3s, b3s,
     ntW1, ntb1, ntW2, ntb2, etW1, etb1, etW2, etb2) = params
    (node_types, src, dst, dist, centers, sel_edge_idx,
     node_index, source_index, target_index) = graph
    n, e = node_types.shape[0], src.shape[0]
    nn, ne = node_index.shape[0], source_index.shape[0]
    lf, lb = f32_layout(n, e, nn, ne), bf16_layout(n, e)
    hp = jax.lax.Precision.HIGHEST

    # ------------------------------- f32 slab ----------------------------------
    f = jnp.zeros((lf["_rows"], LANES), jnp.float32)
    f = f.at[lf["node0"]:lf["node0"] + n, 0:DIM].set(emb_table[node_types])
    # radial gated so that padded centers (offset 1e4) and masked edges (offset
    # 1e6) drive exp(coef*r^2) to exactly 0; masked edges get edge_mask back
    # through the additive override.  All math stays f32 (see review note).
    centers_pad = jnp.full((N_CENTERS_PAD,), 1e4, jnp.float32).at[:N_CENTERS].set(centers)
    sel_mask = jnp.zeros((e,), jnp.float32).at[sel_edge_idx].set(1.0)
    radial = dist[:, None] - centers_pad[None, :] + 1e6 * sel_mask[:, None]
    emask_pad = jnp.zeros((N_CENTERS_PAD,), jnp.float32).at[:N_CENTERS].set(edge_mask_param[0])
    rbf_ovr = sel_mask[:, None] * emask_pad[None, :]
    f = f.at[lf["radial"]:lf["radial"] + e, 0:N_CENTERS_PAD].set(radial)
    f = f.at[lf["rbfovr"]:lf["rbfovr"] + e, 0:N_CENTERS_PAD].set(rbf_ovr)
    # per-layer biases (all 3 layers stacked on lanes): [cfb1 | cfb2 | b2 | b3]
    bias = jnp.stack([cfb1s[:, 0, :].reshape(-1), cfb2s[:, 0, :].reshape(-1),
                      b2s[:, 0, :].reshape(-1), b3s[:, 0, :].reshape(-1)], axis=0)
    f = f.at[lf["bias"]:lf["bias"] + 4, 0:LANES].set(bias)
    # folded heads (no activation between layer1/layer2 in the torch forward)
    W_nt = jnp.dot(ntW1, ntW2, precision=hp)
    b_nt = jnp.dot(ntb1, ntW2, precision=hp) + ntb2
    W_et = jnp.dot(etW1, etW2, precision=hp)                    # (128, 5): single K=128 head
    b_et = jnp.dot(etb1, etW2, precision=hp) + etb2
    f = f.at[lf["wnt"]:lf["wnt"] + DIM, 0:HEAD_NODE_O].set(W_nt)
    f = f.at[lf["wet"]:lf["wet"] + 2 * DIM, 0:HEAD_EDGE_O].set(W_et)
    f = f.at[lf["headb"], 0:HEAD_NODE_O].set(b_nt[0])
    f = f.at[lf["headb"] + 1, 0:HEAD_EDGE_O].set(b_et[0])
    # selection one-hots kept f32 so the head path stays f32 (accuracy note)
    f = f.at[lf["seln"]:lf["seln"] + nn, 0:n].set(jax.nn.one_hot(node_index, n, dtype=jnp.float32))
    f = f.at[lf["sels"]:lf["sels"] + ne, 0:n].set(jax.nn.one_hot(source_index, n, dtype=jnp.float32))
    f = f.at[lf["selt"]:lf["selt"] + ne, 0:n].set(jax.nn.one_hot(target_index, n, dtype=jnp.float32))

    # ------------------------------- bf16 slab ---------------------------------
    b = jnp.zeros((lb["_rows"], LANES), jnp.float32)
    for l in range(N_CONV):
        lo = l * DIM
        b = b.at[lb["cfw1"]:lb["cfw1"] + N_CENTERS, lo:lo + DIM].set(cfW1s[l])
        b = b.at[lb["cfw2"] + lo:lb["cfw2"] + lo + DIM, lo:lo + DIM].set(cfW2s[l])  # block-diag
        r0 = lb["convw"] + lo
        b = b.at[r0:r0 + DIM, 0:DIM].set(W1s[l])
        b = b.at[r0:r0 + DIM, DIM:2 * DIM].set(W2s[l])
        b = b.at[r0:r0 + DIM, 2 * DIM:3 * DIM].set(W3s[l])
    b = b.at[lb["src"]:lb["src"] + e, 0:n].set(jax.nn.one_hot(src, n, dtype=jnp.float32))
    b = b.at[lb["dstt"]:lb["dstt"] + n, 0:e].set(jax.nn.one_hot(dst, n, dtype=jnp.float32).T)
    b = b.astype(jnp.bfloat16)

    return f, b, dict(n=n, e=e, nn=nn, ne=ne), lf, lb


# ----------------------------- pure-JAX reference -----------------------------
def reference_forward(params, graph, coef):
    hp = jax.lax.Precision.HIGHEST
    dot = functools.partial(jnp.dot, precision=hp)
    (emb_table, edge_mask_param, W1s, cfW1s, cfb1s, cfW2s, cfb2s, W2s, b2s, W3s, b3s,
     ntW1, ntb1, ntW2, ntb2, etW1, etb1, etW2, etb2) = params
    (node_types, src, dst, dist, centers, sel_edge_idx,
     node_index, source_index, target_index) = graph

    rbf = jnp.exp(coef * (dist[:, None] - centers[None, :]) ** 2)
    rbf = rbf.at[sel_edge_idx].set(edge_mask_param[0])
    node = emb_table[node_types]
    for l in range(N_CONV):
        new_node = dot(node, W1s[l])
        h = _softplus05(dot(rbf, cfW1s[l]) + cfb1s[l, 0])
        h = dot(h, cfW2s[l]) + cfb2s[l, 0]
        msg = new_node[src] * h
        agg = jnp.zeros_like(node).at[dst].add(msg)
        cf1a = _softplus05(dot(agg, W2s[l]) + b2s[l, 0])
        node = node + dot(cf1a, W3s[l]) + b3s[l, 0]
    nsel = node[node_index]
    nt = dot(dot(nsel, ntW1) + ntb1[0], ntW2) + ntb2[0]
    ef = jnp.concatenate([node[source_index], node[target_index]], axis=1)
    et = dot(dot(ef, etW1) + etb1[0], etW2) + etb2[0]
    return nt, et


# ------------------------------------ main -------------------------------------
if __name__ == "__main__":
    N, E = 16, 32                     # nodes / edges in the synthetic graph
    NN_SEL, NE_SEL, N_MASK = 8, 8, 4  # selected nodes / node-pairs / masked edges
    NUM_ATOM_TYPES = 16

    key = jax.random.PRNGKey(0)
    kit = iter(jax.random.split(key, 64))

    def nrm(shape, scale=0.05):
        return (scale * jax.random.normal(next(kit), shape)).astype(jnp.float32)

    # ---- deterministic parameters (shapes per module __init__) ----
    emb_table = nrm((NUM_ATOM_TYPES, DIM), 0.1).at[0].set(0.0)    # padding_idx=0
    edge_mask_param = jnp.zeros((1, N_CENTERS), jnp.float32)      # nn.Parameter(zeros(50))
    W1s = nrm((N_CONV, DIM, DIM));      cfW1s = nrm((N_CONV, N_CENTERS, DIM))
    cfb1s = nrm((N_CONV, 1, DIM), 0.01); cfW2s = nrm((N_CONV, DIM, DIM))
    cfb2s = nrm((N_CONV, 1, DIM), 0.01); W2s = nrm((N_CONV, DIM, DIM))
    b2s = nrm((N_CONV, 1, DIM), 0.01);   W3s = nrm((N_CONV, DIM, DIM))
    b3s = nrm((N_CONV, 1, DIM), 0.01)
    ntW1 = nrm((DIM, HEAD_NODE_H));       ntb1 = nrm((1, HEAD_NODE_H), 0.01)
    ntW2 = nrm((HEAD_NODE_H, HEAD_NODE_O)); ntb2 = nrm((1, HEAD_NODE_O), 0.01)
    etW1 = nrm((2 * DIM, HEAD_EDGE_H));   etb1 = nrm((1, HEAD_EDGE_H), 0.01)
    etW2 = nrm((HEAD_EDGE_H, HEAD_EDGE_O)); etb2 = nrm((1, HEAD_EDGE_O), 0.01)

    # ---- deterministic synthetic graph + SSL indices ----
    node_types = jax.random.randint(next(kit), (N,), 1, NUM_ATOM_TYPES)
    src = jax.random.randint(next(kit), (E,), 0, N)
    dst = jax.random.randint(next(kit), (E,), 0, N)
    dist = jax.random.uniform(next(kit), (E,), jnp.float32, 0.5, CUTOFF)
    node_index = jax.random.randint(next(kit), (NN_SEL,), 0, N)
    source_index = jax.random.randint(next(kit), (NE_SEL,), 0, N)
    target_index = jax.random.randint(next(kit), (NE_SEL,), 0, N)
    select_edge_index = jax.random.permutation(next(kit), E)[:N_MASK]

    centers_np = np.linspace(0.0, CUTOFF, N_CENTERS).astype(np.float32)
    centers = jnp.asarray(centers_np)
    gap = float(centers_np[1] - centers_np[0])   # RBFLayer re-derives gap from linspace
    coef = -1.0 / gap

    params = (emb_table, edge_mask_param, W1s, cfW1s, cfb1s, cfW2s, cfb2s,
              W2s, b2s, W3s, b3s, ntW1, ntb1, ntW2, ntb2, etW1, etb1, etW2, etb2)
    graph = (node_types, src, dst, dist, centers, select_edge_index,
             node_index, source_index, target_index)

    fslab, bslab, dims, lf, lb = pack_slabs(params, graph)

    # advisory cost estimate for the XLA scheduler
    flops = (2 * E * N_CENTERS_PAD * LANES                  # rbf @ cfW1 (all layers)
             + 2 * E * LANES * LANES                        # h1 @ block-diag cfW2
             + N_CONV * (3 * 2 * N * DIM * DIM              # W1, W2, W3
                         + 2 * 2 * E * N * DIM)             # gather + scatter
             + 2 * (NN_SEL + 2 * NE_SEL) * N * DIM          # selection gather
             + 2 * NN_SEL * DIM * HEAD_PAD
             + 2 * NE_SEL * 2 * DIM * HEAD_PAD)
    transc = E * N_CENTERS_PAD + 2 * E * LANES + 2 * N_CONV * N * DIM
    bytes_acc = (fslab.size * 4 + bslab.size * 2 + (NN_SEL + NE_SEL) * HEAD_PAD * 4)
    cost = pl.CostEstimate(flops=int(flops), transcendentals=int(transc),
                           bytes_accessed=int(bytes_acc))

    node_type, edge_type = jax.block_until_ready(
        schnet_forward(fslab, bslab, coef=coef, dims=dims, lf=lf, lb=lb, cost=cost))

    # ---- check against pure-JAX reference ----
    nt_ref, et_ref = reference_forward(params, graph, coef)
    assert node_type.shape == (NN_SEL, HEAD_NODE_O)
    assert edge_type.shape == (NE_SEL, HEAD_EDGE_O)
    np.testing.assert_allclose(np.asarray(node_type), np.asarray(nt_ref), rtol=1e-2, atol=1e-2)
    np.testing.assert_allclose(np.asarray(edge_type), np.asarray(et_ref), rtol=1e-2, atol=1e-2)
    print("KERNEL_OK")
</pallas_src>

<mosaic_0001>
module attributes {stable_mosaic.version = 11 : i64} {
  func.func @schnet_kernel(%arg0: memref<312x192xf32, #tpu.memory_space<vmem>>, %arg1: memref<496x192xbf16, #tpu.memory_space<vmem>>, %arg2: memref<8x128xf32, #tpu.memory_space<vmem>>, %arg3: memref<8x128xf32, #tpu.memory_space<vmem>>) attributes {dimension_semantics = [], scalar_prefetch = 0 : i64, scratch_operands = 0 : i64, tpu.core_type = #tpu.core_type<tc>} {
    %c16 = arith.constant 16 : index
    %c0 = arith.constant 0 : index
    %0 = vector.load %arg0[%c16, %c0] : memref<312x192xf32, #tpu.memory_space<vmem>>, vector<32x64xf32>
    %c48 = arith.constant 48 : index
    %c0_0 = arith.constant 0 : index
    %1 = vector.load %arg0[%c48, %c0_0] : memref<312x192xf32, #tpu.memory_space<vmem>>, vector<32x64xf32>
    %cst = arith.constant -9.79999923 : f32
    %2 = vector.broadcast %cst : f32 to vector<32x64xf32>
    %3 = arith.mulf %2, %0 : vector<32x64xf32>
    %4 = arith.mulf %3, %0 : vector<32x64xf32>
    %5 = math.exp %4 : vector<32x64xf32>
    %6 = arith.addf %5, %1 : vector<32x64xf32>
    %c80 = arith.constant 80 : index
    %c0_1 = arith.constant 0 : index
    %7 = vector.load %arg0[%c80, %c0_1] : memref<312x192xf32, #tpu.memory_space<vmem>>, vector<4x192xf32>
    %c0_2 = arith.constant 0 : index
    %c0_3 = arith.constant 0 : index
    %8 = vector.load %arg1[%c0_2, %c0_3] : memref<496x192xbf16, #tpu.memory_space<vmem>>, vector<64x192xbf16>
    %c64 = arith.constant 64 : index
    %c0_4 = arith.constant 0 : index
    %9 = vector.load %arg1[%c64, %c0_4] : memref<496x192xbf16, #tpu.memory_space<vmem>>, vector<192x192xbf16>
    %10 = arith.truncf %6 : vector<32x64xf32> to vector<32x64xbf16>
    %cst_5 = arith.constant dense<0.000000e+00> : vector<32x192xf32>
    %11 = tpu.matmul %10, %8, %cst_5 {dimension_numbers = #tpu.dot_dimension_numbers<[1], [0], [0], [1], [0, 0, 1, 1], [], []>} : vector<32x64xbf16>, vector<64x192xbf16>, vector<32x192xf32> -> vector<32x192xf32>
    %12 = vector.extract_strided_slice %7 {offsets = [0, 0], sizes = [1, 192], strides = [1, 1]} : vector<4x192xf32> to vector<1x192xf32>
    %13 = vector.broadcast %12 : vector<1x192xf32> to vector<32x192xf32>
    %14 = arith.addf %11, %13 : vector<32x192xf32>
    %cst_6 = arith.constant 5.000000e-01 : f32
    %15 = vector.broadcast %cst_6 : f32 to vector<32x192xf32>
    %16 = arith.mulf %15, %14 : vector<32x192xf32>
    %cst_7 = arith.constant 1.400000e+01 : f32
    %17 = vector.broadcast %cst_7 : f32 to vector<32x192xf32>
    %18 = arith.cmpf ogt, %16, %17 : vector<32x192xf32>
    %cst_8 = arith.constant 1.400000e+01 : f32
    %19 = vector.broadcast %cst_8 : f32 to vector<32x192xf32>
    %20 = arith.minimumf %16, %19 : vector<32x192xf32>
    %21 = math.exp %20 : vector<32x192xf32>
    %22 = math.log1p %21 : vector<32x192xf32>
    %cst_9 = arith.constant 2.000000e+00 : f32
    %23 = vector.broadcast %cst_9 : f32 to vector<32x192xf32>
    %24 = arith.mulf %23, %22 : vector<32x192xf32>
    %25 = arith.select %18, %14, %24 : vector<32x192xi1>, vector<32x192xf32>
    %26 = arith.truncf %25 : vector<32x192xf32> to vector<32x192xbf16>
    %cst_10 = arith.constant dense<0.000000e+00> : vector<32x192xf32>
    %27 = tpu.matmul %26, %9, %cst_10 {dimension_numbers = #tpu.dot_dimension_numbers<[1], [0], [0], [1], [0, 0, 1, 1], [], []>} : vector<32x192xbf16>, vector<192x192xbf16>, vector<32x192xf32> -> vector<32x192xf32>
    %28 = vector.extract_strided_slice %7 {offsets = [1, 0], sizes = [1, 192], strides = [1, 1]} : vector<4x192xf32> to vector<1x192xf32>
    %29 = vector.broadcast %28 : vector<1x192xf32> to vector<32x192xf32>
    %30 = arith.addf %27, %29 : vector<32x192xf32>
    %31 = arith.truncf %30 : vector<32x192xf32> to vector<32x192xbf16>
    %c448 = arith.constant 448 : index
    %c0_11 = arith.constant 0 : index
    %32 = vector.load %arg1[%c448, %c0_11] : memref<496x192xbf16, #tpu.memory_space<vmem>>, vector<32x16xbf16>
    %c480 = arith.constant 480 : index
    %c0_12 = arith.constant 0 : index
    %33 = vector.load %arg1[%c480, %c0_12] : memref<496x192xbf16, #tpu.memory_space<vmem>>, vector<16x32xbf16>
    %c0_13 = arith.constant 0 : index
    %c0_14 = arith.constant 0 : index
    %34 = vector.load %arg0[%c0_13, %c0_14] : memref<312x192xf32, #tpu.memory_space<vmem>>, vector<16x64xf32>
    %c256 = arith.constant 256 : index
    %c0_15 = arith.constant 0 : index
    %35 = vector.load %arg1[%c256, %c0_15] : memref<496x192xbf16, #tpu.memory_space<vmem>>, vector<64x64xbf16>
    %c256_16 = arith.constant 256 : index
    %c64_17 = arith.constant 64 : index
    %36 = vector.load %arg1[%c256_16, %c64_17] : memref<496x192xbf16, #tpu.memory_space<vmem>>, vector<64x64xbf16>
    %c256_18 = arith.constant 256 : index
    %c128 = arith.constant 128 : index
    %37 = vector.load %arg1[%c256_18, %c128] : memref<496x192xbf16, #tpu.memory_space<vmem>>, vector<64x64xbf16>
    %38 = arith.truncf %34 : vector<16x64xf32> to vector<16x64xbf16>
    %cst_19 = arith.constant dense<0.000000e+00> : vector<16x64xf32>
    %39 = tpu.matmul %38, %35, %cst_19 {dimension_numbers = #tpu.dot_dimension_numbers<[1], [0], [0], [1], [0, 0, 1, 1], [], []>} : vector<16x64xbf16>, vector<64x64xbf16>, vector<16x64xf32> -> vector<16x64xf32>
    %40 = arith.truncf %39 : vector<16x64xf32> to vector<16x64xbf16>
    %cst_20 = arith.constant dense<0.000000e+00> : vector<32x64xf32>
    %41 = tpu.matmul %32, %40, %cst_20 {dimension_numbers = #tpu.dot_dimension_numbers<[1], [0], [0], [1], [0, 0, 1, 1], [], []>} : vector<32x16xbf16>, vector<16x64xbf16>, vector<32x64xf32> -> vector<32x64xf32>
    %42 = arith.truncf %41 : vector<32x64xf32> to vector<32x64xbf16>
    %43 = vector.extract_strided_slice %31 {offsets = [0, 0], sizes = [32, 64], strides = [1, 1]} : vector<32x192xbf16> to vector<32x64xbf16>
    %44 = arith.mulf %42, %43 : vector<32x64xbf16>
    %cst_21 = arith.constant dense<0.000000e+00> : vector<16x64xf32>
    %45 = tpu.matmul %33, %44, %cst_21 {dimension_numbers = #tpu.dot_dimension_numbers<[1], [0], [0], [1], [0, 0, 1, 1], [], []>} : vector<16x32xbf16>, vector<32x64xbf16>, vector<16x64xf32> -> vector<16x64xf32>
    %46 = arith.truncf %45 : vector<16x64xf32> to vector<16x64xbf16>
    %cst_22 = arith.constant dense<0.000000e+00> : vector<16x64xf32>
    %47 = tpu.matmul %46, %36, %cst_22 {dimension_numbers = #tpu.dot_dimension_numbers<[1], [0], [0], [1], [0, 0, 1, 1], [], []>} : vector<16x64xbf16>, vector<64x64xbf16>, vector<16x64xf32> -> vector<16x64xf32>
    %48 = vector.extract_strided_slice %7 {offsets = [2, 0], sizes = [1, 64], strides = [1, 1]} : vector<4x192xf32> to vector<1x64xf32>
    %49 = vector.broadcast %48 : vector<1x64xf32> to vector<16x64xf32>
    %50 = arith.addf %47, %49 : vector<16x64xf32>
    %cst_23 = arith.constant 5.000000e-01 : f32
    %51 = vector.broadcast %cst_23 : f32 to vector<16x64xf32>
    %52 = arith.mulf %51, %50 : vector<16x64xf32>
    %cst_24 = arith.constant 1.400000e+01 : f32
    %53 = vector.broadcast %cst_24 : f32 to vector<16x64xf32>
    %54 = arith.cmpf ogt, %52, %53 : vector<16x64xf32>
    %cst_25 = arith.constant 1.400000e+01 : f32
    %55 = vector.broadcast %cst_25 : f32 to vector<16x64xf32>
    %56 = arith.minimumf %52, %55 : vector<16x64xf32>
    %57 = math.exp %56 : vector<16x64xf32>
    %58 = math.log1p %57 : vector<16x64xf32>
    %cst_26 = arith.constant 2.000000e+00 : f32
    %59 = vector.broadcast %cst_26 : f32 to vector<16x64xf32>
    %60 = arith.mulf %59, %58 : vector<16x64xf32>
    %61 = arith.select %54, %50, %60 : vector<16x64xi1>, vector<16x64xf32>
    %62 = arith.truncf %61 : vector<16x64xf32> to vector<16x64xbf16>
    %cst_27 = arith.constant dense<0.000000e+00> : vector<16x64xf32>
    %63 = tpu.matmul %62, %37, %cst_27 {dimension_numbers = #tpu.dot_dimension_numbers<[1], [0], [0], [1], [0, 0, 1, 1], [], []>} : vector<16x64xbf16>, vector<64x64xbf16>, vector<16x64xf32> -> vector<16x64xf32>
    %64 = arith.addf %34, %63 : vector<16x64xf32>
    %65 = vector.extract_strided_slice %7 {offsets = [3, 0], sizes = [1, 64], strides = [1, 1]} : vector<4x192xf32> to vector<1x64xf32>
    %66 = vector.broadcast %65 : vector<1x64xf32> to vector<16x64xf32>
    %67 = arith.addf %64, %66 : vector<16x64xf32>
    %c320 = arith.constant 320 : index
    %c0_28 = arith.constant 0 : index
    %68 = vector.load %arg1[%c320, %c0_28] : memref<496x192xbf16, #tpu.memory_space<vmem>>, vector<64x64xbf16>
    %c320_29 = arith.constant 320 : index
    %c64_30 = arith.constant 64 : index
    %69 = vector.load %arg1[%c320_29, %c64_30] : memref<496x192xbf16, #tpu.memory_space<vmem>>, vector<64x64xbf16>
    %c320_31 = arith.constant 320 : index
    %c128_32 = arith.constant 128 : index
    %70 = vector.load %arg1[%c320_31, %c128_32] : memref<496x192xbf16, #tpu.memory_space<vmem>>, vector<64x64xbf16>
    %71 = arith.truncf %67 : vector<16x64xf32> to vector<16x64xbf16>
    %cst_33 = arith.constant dense<0.000000e+00> : vector<16x64xf32>
    %72 = tpu.matmul %71, %68, %cst_33 {dimension_numbers = #tpu.dot_dimension_numbers<[1], [0], [0], [1], [0, 0, 1, 1], [], []>} : vector<16x64xbf16>, vector<64x64xbf16>, vector<16x64xf32> -> vector<16x64xf32>
    %73 = arith.truncf %72 : vector<16x64xf32> to vector<16x64xbf16>
    %cst_34 = arith.constant dense<0.000000e+00> : vector<32x64xf32>
    %74 = tpu.matmul %32, %73, %cst_34 {dimension_numbers = #tpu.dot_dimension_numbers<[1], [0], [0], [1], [0, 0, 1, 1], [], []>} : vector<32x16xbf16>, vector<16x64xbf16>, vector<32x64xf32> -> vector<32x64xf32>
    %75 = arith.truncf %74 : vector<32x64xf32> to vector<32x64xbf16>
    %76 = vector.extract_strided_slice %31 {offsets = [0, 64], sizes = [32, 64], strides = [1, 1]} : vector<32x192xbf16> to vector<32x64xbf16>
    %77 = arith.mulf %75, %76 : vector<32x64xbf16>
    %cst_35 = arith.constant dense<0.000000e+00> : vector<16x64xf32>
    %78 = tpu.matmul %33, %77, %cst_35 {dimension_numbers = #tpu.dot_dimension_numbers<[1], [0], [0], [1], [0, 0, 1, 1], [], []>} : vector<16x32xbf16>, vector<32x64xbf16>, vector<16x64xf32> -> vector<16x64xf32>
    %79 = arith.truncf %78 : vector<16x64xf32> to vector<16x64xbf16>
    %cst_36 = arith.constant dense<0.000000e+00> : vector<16x64xf32>
    %80 = tpu.matmul %79, %69, %cst_36 {dimension_numbers = #tpu.dot_dimension_numbers<[1], [0], [0], [1], [0, 0, 1, 1], [], []>} : vector<16x64xbf16>, vector<64x64xbf16>, vector<16x64xf32> -> vector<16x64xf32>
    %81 = vector.extract_strided_slice %7 {offsets = [2, 64], sizes = [1, 64], strides = [1, 1]} : vector<4x192xf32> to vector<1x64xf32>
    %82 = vector.broadcast %81 : vector<1x64xf32> to vector<16x64xf32>
    %83 = arith.addf %80, %82 : vector<16x64xf32>
    %cst_37 = arith.constant 5.000000e-01 : f32
    %84 = vector.broadcast %cst_37 : f32 to vector<16x64xf32>
    %85 = arith.mulf %84, %83 : vector<16x64xf32>
    %cst_38 = arith.constant 1.400000e+01 : f32
    %86 = vector.broadcast %cst_38 : f32 to vector<16x64xf32>
    %87 = arith.cmpf ogt, %85, %86 : vector<16x64xf32>
    %cst_39 = arith.constant 1.400000e+01 : f32
    %88 = vector.broadcast %cst_39 : f32 to vector<16x64xf32>
    %89 = arith.minimumf %85, %88 : vector<16x64xf32>
    %90 = math.exp %89 : vector<16x64xf32>
    %91 = math.log1p %90 : vector<16x64xf32>
    %cst_40 = arith.constant 2.000000e+00 : f32
    %92 = vector.broadcast %cst_40 : f32 to vector<16x64xf32>
    %93 = arith.mulf %92, %91 : vector<16x64xf32>
    %94 = arith.select %87, %83, %93 : vector<16x64xi1>, vector<16x64xf32>
    %95 = arith.truncf %94 : vector<16x64xf32> to vector<16x64xbf16>
    %cst_41 = arith.constant dense<0.000000e+00> : vector<16x64xf32>
    %96 = tpu.matmul %95, %70, %cst_41 {dimension_numbers = #tpu.dot_dimension_numbers<[1], [0], [0], [1], [0, 0, 1, 1], [], []>} : vector<16x64xbf16>, vector<64x64xbf16>, vector<16x64xf32> -> vector<16x64xf32>
    %97 = arith.addf %67, %96 : vector<16x64xf32>
    %98 = vector.extract_strided_slice %7 {offsets = [3, 64], sizes = [1, 64], strides = [1, 1]} : vector<4x192xf32> to vector<1x64xf32>
    %99 = vector.broadcast %98 : vector<1x64xf32> to vector<16x64xf32>
    %100 = arith.addf %97, %99 : vector<16x64xf32>
    %c384 = arith.constant 384 : index
    %c0_42 = arith.constant 0 : index
    %101 = vector.load %arg1[%c384, %c0_42] : memref<496x192xbf16, #tpu.memory_space<vmem>>, vector<64x64xbf16>
    %c384_43 = arith.constant 384 : index
    %c64_44 = arith.constant 64 : index
    %102 = vector.load %arg1[%c384_43, %c64_44] : memref<496x192xbf16, #tpu.memory_space<vmem>>, vector<64x64xbf16>
    %c384_45 = arith.constant 384 : index
    %c128_46 = arith.constant 128 : index
    %103 = vector.load %arg1[%c384_45, %c128_46] : memref<496x192xbf16, #tpu.memory_space<vmem>>, vector<64x64xbf16>
    %104 = arith.truncf %100 : vector<16x64xf32> to vector<16x64xbf16>
    %cst_47 = arith.constant dense<0.000000e+00> : vector<16x64xf32>
    %105 = tpu.matmul %104, %101, %cst_47 {dimension_numbers = #tpu.dot_dimension_numbers<[1], [0], [0], [1], [0, 0, 1, 1], [], []>} : vector<16x64xbf16>, vector<64x64xbf16>, vector<16x64xf32> -> vector<16x64xf32>
    %106 = arith.truncf %105 : vector<16x64xf32> to vector<16x64xbf16>
    %cst_48 = arith.constant dense<0.000000e+00> : vector<32x64xf32>
    %107 = tpu.matmul %32, %106, %cst_48 {dimension_numbers = #tpu.dot_dimension_numbers<[1], [0], [0], [1], [0, 0, 1, 1], [], []>} : vector<32x16xbf16>, vector<16x64xbf16>, vector<32x64xf32> -> vector<32x64xf32>
    %108 = arith.truncf %107 : vector<32x64xf32> to vector<32x64xbf16>
    %109 = vector.extract_strided_slice %31 {offsets = [0, 128], sizes = [32, 64], strides = [1, 1]} : vector<32x192xbf16> to vector<32x64xbf16>
    %110 = arith.mulf %108, %109 : vector<32x64xbf16>
    %cst_49 = arith.constant dense<0.000000e+00> : vector<16x64xf32>
    %111 = tpu.matmul %33, %110, %cst_49 {dimension_numbers = #tpu.dot_dimension_numbers<[1], [0], [0], [1], [0, 0, 1, 1], [], []>} : vector<16x32xbf16>, vector<32x64xbf16>, vector<16x64xf32> -> vector<16x64xf32>
    %112 = arith.truncf %111 : vector<16x64xf32> to vector<16x64xbf16>
    %cst_50 = arith.constant dense<0.000000e+00> : vector<16x64xf32>
    %113 = tpu.matmul %112, %102, %cst_50 {dimension_numbers = #tpu.dot_dimension_numbers<[1], [0], [0], [1], [0, 0, 1, 1], [], []>} : vector<16x64xbf16>, vector<64x64xbf16>, vector<16x64xf32> -> vector<16x64xf32>
    %114 = vector.extract_strided_slice %7 {offsets = [2, 128], sizes = [1, 64], strides = [1, 1]} : vector<4x192xf32> to vector<1x64xf32>
    %115 = vector.broadcast %114 : vector<1x64xf32> to vector<16x64xf32>
    %116 = arith.addf %113, %115 : vector<16x64xf32>
    %cst_51 = arith.constant 5.000000e-01 : f32
    %117 = vector.broadcast %cst_51 : f32 to vector<16x64xf32>
    %118 = arith.mulf %117, %116 : vector<16x64xf32>
    %cst_52 = arith.constant 1.400000e+01 : f32
    %119 = vector.broadcast %cst_52 : f32 to vector<16x64xf32>
    %120 = arith.cmpf ogt, %118, %119 : vector<16x64xf32>
    %cst_53 = arith.constant 1.400000e+01 : f32
    %121 = vector.broadcast %cst_53 : f32 to vector<16x64xf32>
    %122 = arith.minimumf %118, %121 : vector<16x64xf32>
    %123 = math.exp %122 : vector<16x64xf32>
    %124 = math.log1p %123 : vector<16x64xf32>
    %cst_54 = arith.constant 2.000000e+00 : f32
    %125 = vector.broadcast %cst_54 : f32 to vector<16x64xf32>
    %126 = arith.mulf %125, %124 : vector<16x64xf32>
    %127 = arith.select %120, %116, %126 : vector<16x64xi1>, vector<16x64xf32>
    %128 = arith.truncf %127 : vector<16x64xf32> to vector<16x64xbf16>
    %cst_55 = arith.constant dense<0.000000e+00> : vector<16x64xf32>
    %129 = tpu.matmul %128, %103, %cst_55 {dimension_numbers = #tpu.dot_dimension_numbers<[1], [0], [0], [1], [0, 0, 1, 1], [], []>} : vector<16x64xbf16>, vector<64x64xbf16>, vector<16x64xf32> -> vector<16x64xf32>
    %130 = arith.addf %100, %129 : vector<16x64xf32>
    %131 = vector.extract_strided_slice %7 {offsets = [3, 128], sizes = [1, 64], strides = [1, 1]} : vector<4x192xf32> to vector<1x64xf32>
    %132 = vector.broadcast %131 : vector<1x64xf32> to vector<16x64xf32>
    %133 = arith.addf %130, %132 : vector<16x64xf32>
    %c96 = arith.constant 96 : index
    %c0_56 = arith.constant 0 : index
    %134 = vector.load %arg0[%c96, %c0_56] : memref<312x192xf32, #tpu.memory_space<vmem>>, vector<8x16xf32>
    %c104 = arith.constant 104 : index
    %c0_57 = arith.constant 0 : index
    %135 = vector.load %arg0[%c104, %c0_57] : memref<312x192xf32, #tpu.memory_space<vmem>>, vector<8x16xf32>
    %c112 = arith.constant 112 : index
    %c0_58 = arith.constant 0 : index
    %136 = vector.load %arg0[%c112, %c0_58] : memref<312x192xf32, #tpu.memory_space<vmem>>, vector<8x16xf32>
    %c120 = arith.constant 120 : index
    %c0_59 = arith.constant 0 : index
    %137 = vector.load %arg0[%c120, %c0_59] : memref<312x192xf32, #tpu.memory_space<vmem>>, vector<64x128xf32>
    %c184 = arith.constant 184 : index
    %c0_60 = arith.constant 0 : index
    %138 = vector.load %arg0[%c184, %c0_60] : memref<312x192xf32, #tpu.memory_space<vmem>>, vector<128x128xf32>
    %c88 = arith.constant 88 : index
    %c0_61 = arith.constant 0 : index
    %139 = vector.load %arg0[%c88, %c0_61] : memref<312x192xf32, #tpu.memory_space<vmem>>, vector<2x128xf32>
    %cst_62 = arith.constant dense<0.000000e+00> : vector<8x64xf32>
    %140 = tpu.matmul %134, %133, %cst_62 {dimension_numbers = #tpu.dot_dimension_numbers<[1], [0], [0], [1], [0, 0, 1, 1], [], []>} : vector<8x16xf32>, vector<16x64xf32>, vector<8x64xf32> -> vector<8x64xf32>
    %cst_63 = arith.constant dense<0.000000e+00> : vector<8x64xf32>
    %141 = tpu.matmul %135, %133, %cst_63 {dimension_numbers = #tpu.dot_dimension_numbers<[1], [0], [0], [1], [0, 0, 1, 1], [], []>} : vector<8x16xf32>, vector<16x64xf32>, vector<8x64xf32> -> vector<8x64xf32>
    %cst_64 = arith.constant dense<0.000000e+00> : vector<8x64xf32>
    %142 = tpu.matmul %136, %133, %cst_64 {dimension_numbers = #tpu.dot_dimension_numbers<[1], [0], [0], [1], [0, 0, 1, 1], [], []>} : vector<8x16xf32>, vector<16x64xf32>, vector<8x64xf32> -> vector<8x64xf32>
    %143 = tpu.concatenate %141, %142 in 1 : vector<8x64xf32>, vector<8x64xf32> -> vector<8x128xf32>
    %cst_65 = arith.constant dense<0.000000e+00> : vector<8x128xf32>
    %144 = tpu.matmul %140, %137, %cst_65 {dimension_numbers = #tpu.dot_dimension_numbers<[1], [0], [0], [1], [0, 0, 1, 1], [], []>} : vector<8x64xf32>, vector<64x128xf32>, vector<8x128xf32> -> vector<8x128xf32>
    %145 = vector.extract_strided_slice %139 {offsets = [0, 0], sizes = [1, 128], strides = [1, 1]} : vector<2x128xf32> to vector<1x128xf32>
    %146 = vector.broadcast %145 : vector<1x128xf32> to vector<8x128xf32>
    %147 = arith.addf %144, %146 : vector<8x128xf32>
    %c0_66 = arith.constant 0 : index
    %c0_67 = arith.constant 0 : index
    %148 = vector.load %arg2[%c0_66, %c0_67] : memref<8x128xf32, #tpu.memory_space<vmem>>, vector<8x128xf32>
    tpu.vector_store %arg2[%c0_66, %c0_67], %147 {strides = array<i32>} : memref<8x128xf32, #tpu.memory_space<vmem>>, vector<8x128xf32>,
    %cst_68 = arith.constant dense<0.000000e+00> : vector<8x128xf32>
    %149 = tpu.matmul %143, %138, %cst_68 {dimension_numbers = #tpu.dot_dimension_numbers<[1], [0], [0], [1], [0, 0, 1, 1], [], []>} : vector<8x128xf32>, vector<128x128xf32>, vector<8x128xf32> -> vector<8x128xf32>
    %150 = vector.extract_strided_slice %139 {offsets = [1, 0], sizes = [1, 128], strides = [1, 1]} : vector<2x128xf32> to vector<1x128xf32>
    %151 = vector.broadcast %150 : vector<1x128xf32> to vector<8x128xf32>
    %152 = arith.addf %149, %151 : vector<8x128xf32>
    %c0_69 = arith.constant 0 : index
    %c0_70 = arith.constant 0 : index
    %153 = vector.load %arg3[%c0_69, %c0_70] : memref<8x128xf32, #tpu.memory_space<vmem>>, vector<8x128xf32>
    tpu.vector_store %arg3[%c0_69, %c0_70], %152 {strides = array<i32>} : memref<8x128xf32, #tpu.memory_space<vmem>>, vector<8x128xf32>,
    return
  }
}

</mosaic_0001>

<bundles_post_ra>
// kernel: tpu_custom_call.1
= control target key start
LH: loop header
LB: loop body
LE: loop exit
PB: predicated region body
PF: predicated region fallthrough
CT: control target
= control target key end

     0   :  { %9 = vsyncpa [#allocation3], 0  ;;  %s2617_s0 = inlined_call_operand.vmem [shape: f32[312,192], index: 0, kind: input, shape index: {}]   ;;  %s2618_s1 = inlined_call_operand.vmem [shape: bf16[496,192], index: 1, kind: input, shape index: {}]   ;;  %s2619_s2 = inlined_call_operand.hbm [shape: f32[8,128], index: 2, kind: output, shape index: {0}]   ;;  %s2620_s3 = inlined_call_operand.hbm [shape: f32[8,128], index: 3, kind: output, shape index: {1}]  }
   0x1   :  { %v1438_v0 = vld [vmem:[%s2618_s1 + $0x30] sm:$0xf]  ;;  %v1685_v1 = vld [vmem:[%s2618_s1 + $0x34] sm:$0xf0]  ;;  %v1684_v2 = vld [vmem:[%s2618_s1 + $0x34] sm:$0xf] }
   0x2   :  { %v1439_v3 = vor.u32 %v1685_v1, %v1438_v0  ;;  %v1440_v4 = vld [vmem:[%s2618_s1 + $0x38] sm:$0xf0]  ;;  %v1430_v5 = vld [vmem:[%s2618_s1 + $0x20] sm:$0xf]  ;;  %v1683_v6 = vld [vmem:[%s2618_s1 + $0x24] sm:$0xf0] }
   0x3   :  { %v1443_v7 = vor.u32 %v1684_v2, %v1440_v4  ;;  %v1682_v8 = vld [vmem:[%s2618_s1 + $0x24] sm:$0xf]  ;;  %v1432_v9 = vld [vmem:[%s2618_s1 + $0x28] sm:$0xf0]  ;;  %v1431_v10 = vor.u32 %v1683_v6, %v1430_v5  ;;  %v1422_v12 = vld [vmem:[%s2618_s1 + $0x10] sm:$0xf] }
   0x4   :  { %133 = vmatpush.bf16.msra.mxu0 %v1439_v3  ;;  %v1435_v11 = vor.u32 %v1682_v8, %v1432_v9  ;;  %v1681_v13 = vld [vmem:[%s2618_s1 + $0x14] sm:$0xf0]  ;;  %v1680_v14 = vld [vmem:[%s2618_s1 + $0x14] sm:$0xf]  ;;  %v1424_v15 = vld [vmem:[%s2618_s1 + $0x18] sm:$0xf0] }
   0x5   :  { %152 = vmatpush.bf16.msra.mxu1 %v1443_v7  ;;  %v16_v16 = vld [vmem:[%s2617_s0 + $0x20] sm:$0xff]  ;;  %v17_v17 = vld [vmem:[%s2617_s0 + $0x30] sm:$0xff]  ;;  %v1423_v20 = vor.u32 %v1681_v13, %v1422_v12  ;;  %v1427_v22 = vor.u32 %v1680_v14, %v1424_v15  ;;  %v1679_v24 = vld [vmem:[%s2618_s1 + $0x4] sm:$0xf0] }
   0x6   :  { %v24_v18 = vmul.f32 -9.799999, %v16_v16  ;;  %v25_v19 = vmul.f32 -9.799999, %v17_v17  ;;  %v18_v21 = vld [vmem:[%s2617_s0 + $0x40] sm:$0xff]  ;;  %v19_v27 = vld [vmem:[%s2617_s0 + $0x50] sm:$0xff] }
   0x7   :  { %v1414_v23 = vld [vmem:[%s2618_s1] sm:$0xf]  ;;  %v1678_v28 = vld [vmem:[%s2618_s1 + $0x4] sm:$0xf]  ;;  %v1416_v29 = vld [vmem:[%s2618_s1 + $0x8] sm:$0xf0] }
   0x8   :  { %134 = vmatpush.bf16.msra.mxu0 %v1431_v10  ;;  %v28_v25 = vmul.f32 %v24_v18, %v16_v16  ;;  %v29_v26 = vmul.f32 %v25_v19, %v17_v17 }
   0x9   :  { %153 = vmatpush.bf16.msra.mxu1 %v1435_v11 }
   0xa   :  { %10 = vsyncpa [#allocation5], 0  ;;  %v32_v30 = vmul.f32 1.442695, %v28_v25  ;;  %v34_v31 = vmul.f32 1.442695, %v29_v26  ;;  %v1415_v33 = vor.u32 %v1679_v24, %v1414_v23  ;;  %v1419_v35 = vor.u32 %v1678_v28, %v1416_v29 }
   0xb   :  { %v26_v32 = vmul.f32 -9.799999, %v18_v21  ;;  %v27_v34 = vmul.f32 -9.799999, %v19_v27  ;;  %v20_v38 = vld [vmem:[%s2617_s0 + $0x60] sm:$0xff]  ;;  %v21_v39 = vld [vmem:[%s2617_s0 + $0x70] sm:$0xff] }
   0xc   :  { %135 = vmatpush.bf16.msra.mxu0 %v1423_v20  ;;  %1750 = vpow2.f32 %v32_v30  ;;  %vm122_vm0 = vcmask 523264   ;;  %v22_v49 = vld [vmem:[%s2617_s0 + $0x80] sm:$0xff]  ;;  %v23_v50 = vld [vmem:[%s2617_s0 + $0x90] sm:$0xff]  ;;  %v1701_v55 = vld [vmem:[%s2618_s1 + $0xb4] sm:$0xf0]  ;;  %s1867_s18 = smov 64  }
   0xd   :  { %154 = vmatpush.bf16.msra.mxu1 %v1427_v22  ;;  %1752 = vpow2.f32 %v34_v31  ;;  %v30_v36 = vmul.f32 %v26_v32, %v18_v21  ;;  %v31_v37 = vmul.f32 %v27_v34, %v19_v27  ;;  %v1506_v54 = vld [vmem:[%s2618_s1 + $0xb0] sm:$0xf]  ;;  %v1700_v56 = vld [vmem:[%s2618_s1 + $0xb4] sm:$0xf]  ;;  %v1508_v58 = vld [vmem:[%s2618_s1 + $0xb8] sm:$0xf0] }
   0xe   :  { %v1507_v57 = vor.u32 %v1701_v55, %v1506_v54  ;;  %v1511_v59 = vor.u32 %v1700_v56, %v1508_v58  ;;  %v1498_v60 = vld [vmem:[%s2618_s1 + $0xa0] sm:$0xf]  ;;  %v1699_v61 = vld [vmem:[%s2618_s1 + $0xa4] sm:$0xf0]  ;;  %v1698_v62 = vld [vmem:[%s2618_s1 + $0xa4] sm:$0xf] }
   0xf   :  { %v36_v41 = vmul.f32 1.442695, %v30_v36  ;;  %v38_v44 = vmul.f32 1.442695, %v31_v37  ;;  %v1499_v63 = vor.u32 %v1699_v61, %v1498_v60  ;;  %v1500_v0 = vld [vmem:[%s2618_s1 + $0xa8] sm:$0xf0] }
  0x10   :  { %136 = vmatpush.bf16.msra.mxu0 %v1415_v33  ;;  %427 = vmatpush.bf16.msra.mxu2 %v1507_v57  ;;  %v1503_v1 = vor.u32 %v1698_v62, %v1500_v0  ;;  %v1490_v2 = vld [vmem:[%s2618_s1 + $0x90] sm:$0xf]  ;;  %v1697_v3 = vld [vmem:[%s2618_s1 + $0x94] sm:$0xf0]  ;;  %v1696_v4 = vld [vmem:[%s2618_s1 + $0x94] sm:$0xf] }
  0x11   :  { %155 = vmatpush.bf16.msra.mxu1 %v1419_v35  ;;  %1754 = vpow2.f32 %v36_v41  ;;  %v1491_v5 = vor.u32 %v1697_v3, %v1490_v2  ;;  %v1492_v6 = vld [vmem:[%s2618_s1 + $0x98] sm:$0xf0]  ;;  %v1482_v8 = vld [vmem:[%s2618_s1 + $0x80] sm:$0xf]  ;;  %v1695_v9 = vld [vmem:[%s2618_s1 + $0x84] sm:$0xf0] }
  0x12   :  { %v1751_v40 = vpop.eup %1750  ;;  %1756 = vpow2.f32 %v38_v44  ;;  %v1495_v7 = vor.u32 %v1696_v4, %v1492_v6  ;;  %v1694_v10 = vld [vmem:[%s2618_s1 + $0x84] sm:$0xf]  ;;  %v1483_v11 = vor.u32 %v1695_v9, %v1482_v8  ;;  %v1484_v12 = vld [vmem:[%s2618_s1 + $0x88] sm:$0xf0]  ;;  %v2017_v14 = vld [vmem:[%s2617_s0 + $0xa0] sm:$0xf] }
  0x13   :  { %v1753_v42 = vpop.eup %1752  ;;  %v40_v43 = vadd.f32 %v1751_v40, %v20_v38  ;;  %v1487_v13 = vor.u32 %v1694_v10, %v1484_v12  ;;  %v2022_v15 = vld [vmem:[%s2617_s0 + $0xa8] sm:$0xf]  ;;  %v1474_v16 = vld [vmem:[%s2618_s1 + $0x70] sm:$0xf]  ;;  %v1693_v17 = vld [vmem:[%s2618_s1 + $0x74] sm:$0xf0] }
  0x14   :  { %v41_v45 = vadd.f32 %v1753_v42, %v21_v39  ;;  %465 = vmatpush.bf16.msrb.mxu0 %v1511_v59  ;;  %428 = vmatpush.bf16.msra.mxu2 %v1499_v63  ;;  %v1538_v18 = vld [vmem:[%s2618_s1 + $0xf0] sm:$0xf]  ;;  %v1475_v19 = vor.u32 %v1693_v17, %v1474_v16  ;;  %v1709_v20 = vld [vmem:[%s2618_s1 + $0xf4] sm:$0xf0]  ;;  %v1692_v21 = vld [vmem:[%s2618_s1 + $0x74] sm:$0xf] }
  0x15   :  { %v1476_v22 = vld [vmem:[%s2618_s1 + $0x78] sm:$0xf0]  ;;  %v1539_v23 = vor.u32 %v1709_v20, %v1538_v18  ;;  %v1708_v25 = vld [vmem:[%s2618_s1 + $0xf4] sm:$0xf]  ;;  %v2049_v27 = vperm.slane %v2017_v14, 0  ;;  %v2052_v28 = vperm.slane %v2022_v15, 0 }
  0x16   :  { %v78_v46 = vpack.c.bf16 %v41_v45, %v40_v43  ;;  %v1479_v24 = vor.u32 %v1692_v21, %v1476_v22  ;;  %v1540_v26 = vld [vmem:[%s2618_s1 + $0xf8] sm:$0xf0]  ;;  %v1466_v30 = vld [vmem:[%s2618_s1 + $0x60] sm:$0xf]  ;;  %v1691_v31 = vld [vmem:[%s2618_s1 + $0x64] sm:$0xf0] }
  0x17   :  { %v1755_v47 = vpop.eup %1754  ;;  %v1543_v29 = vor.u32 %v1708_v25, %v1540_v26  ;;  %450 = vmatpush.bf16.msra.mxu3 %v1539_v23  ;;  %v1530_v32 = vld [vmem:[%s2618_s1 + $0xe0] sm:$0xf]  ;;  %v1467_v33 = vor.u32 %v1691_v31, %v1466_v30  ;;  %v1707_v34 = vld [vmem:[%s2618_s1 + $0xe4] sm:$0xf0]  ;;  %v1690_v35 = vld [vmem:[%s2618_s1 + $0x64] sm:$0xf] }
  0x18   :  { %1444 = vmatmul.msk.bf16.vlgmr.msra.gmra.mxu0 %vm122_vm0, %v78_v46  ;;  %1446 = vmatmul.msk.bf16.vlgmr.msra.gmra.mxu1 %vm122_vm0, %v78_v46  ;;  %v1757_v48 = vpop.eup %1756  ;;  %v42_v51 = vadd.f32 %v1755_v47, %v22_v49  ;;  %v1468_v36 = vld [vmem:[%s2618_s1 + $0x68] sm:$0xf0]  ;;  %v1531_v37 = vor.u32 %v1707_v34, %v1530_v32  ;;  %v1706_v39 = vld [vmem:[%s2618_s1 + $0xe4] sm:$0xf]  ;;  %v1458_v44 = vld [vmem:[%s2618_s1 + $0x50] sm:$0xf] }
  0x19   :  { %v43_v52 = vadd.f32 %v1757_v48, %v23_v50  ;;  %466 = vmatpush.bf16.msrb.mxu0 %v1503_v1  ;;  %429 = vmatpush.bf16.msra.mxu2 %v1491_v5  ;;  %v1471_v38 = vor.u32 %v1690_v35, %v1468_v36  ;;  %v1532_v40 = vld [vmem:[%s2618_s1 + $0xe8] sm:$0xf0]  ;;  %v1689_v45 = vld [vmem:[%s2618_s1 + $0x54] sm:$0xf0]  ;;  %v1522_v46 = vld [vmem:[%s2618_s1 + $0xd0] sm:$0xf] }
  0x1a   :  { %488 = vmatpush.bf16.msrb.mxu1 %v1543_v29  ;;  %v1535_v41 = vor.u32 %v1706_v39, %v1532_v40  ;;  %v1459_v49 = vor.u32 %v1689_v45, %v1458_v44  ;;  %v1705_v50 = vld [vmem:[%s2618_s1 + $0xd4] sm:$0xf0]  ;;  %v1704_v55 = vld [vmem:[%s2618_s1 + $0xd4] sm:$0xf]  ;;  %v1524_v56 = vld [vmem:[%s2618_s1 + $0xd8] sm:$0xf0] }
  0x1b   :  { %v79_v53 = vpack.c.bf16 %v43_v52, %v42_v51  ;;  %451 = vmatpush.bf16.msra.mxu3 %v1531_v37  ;;  %v1688_v51 = vld [vmem:[%s2618_s1 + $0x54] sm:$0xf]  ;;  %v1460_v52 = vld [vmem:[%s2618_s1 + $0x58] sm:$0xf0]  ;;  %v1450_v57 = vld [vmem:[%s2618_s1 + $0x40] sm:$0xf]  ;;  %v1527_v60 = vor.u32 %v1704_v55, %v1524_v56 }
  0x1c   :  { %v1463_v54 = vor.u32 %v1688_v51, %v1460_v52  ;;  %v1687_v61 = vld [vmem:[%s2618_s1 + $0x44] sm:$0xf0]  ;;  %v1514_v62 = vld [vmem:[%s2618_s1 + $0xc0] sm:$0xf]  ;;  %v1686_v1 = vld [vmem:[%s2618_s1 + $0x44] sm:$0xf] }
  0x1d   :  { %467 = vmatpush.bf16.msrb.mxu0 %v1495_v7  ;;  %430 = vmatpush.bf16.msra.mxu2 %v1483_v11  ;;  %v1451_v63 = vor.u32 %v1687_v61, %v1450_v57  ;;  %v1703_v0 = vld [vmem:[%s2618_s1 + $0xc4] sm:$0xf0]  ;;  %v1452_v2 = vld [vmem:[%s2618_s1 + $0x48] sm:$0xf0]  ;;  %v1702_v5 = vld [vmem:[%s2618_s1 + $0xc4] sm:$0xf] }
  0x1e   :  { %489 = vmatpush.bf16.msrb.mxu1 %v1535_v41  ;;  %v1515_v6 = vor.u32 %v1703_v0, %v1514_v62  ;;  %v1455_v7 = vor.u32 %v1686_v1, %v1452_v2  ;;  %v1516_v8 = vld [vmem:[%s2618_s1 + $0xc8] sm:$0xf0]  ;;  %s1868_s9 = smov [#allocation2]   ;;  %s1387_s13 = sshll.u32 %s2619_s2, 4  ;;  %s1388_s13 = int_to_ptr.hbm [resolvable:$true] %s1387_s13 }
  0x1f   :  { %v1519_v11 = vor.u32 %v1702_v5, %v1516_v8  ;;  %v1562_v5 = vld [vmem:[%s2618_s1 + $0x130] sm:$0xf]  ;;  %s1385_s10 = sshll.u32 %s1868_s9, 4  ;;  %s1386_s10 = int_to_ptr.vmem [resolvable:$true] %s1385_s10 }
  0x21   :  { %468 = vmatpush.bf16.msrb.mxu0 %v1487_v13  ;;  %431 = vmatpush.bf16.msra.mxu2 %v1475_v19 }
  0x22   :  { %490 = vmatpush.bf16.msrb.mxu1 %v1527_v60 }
  0x25   :  { %469 = vmatpush.bf16.msrb.mxu0 %v1479_v24  ;;  %432 = vmatpush.bf16.msra.mxu2 %v1467_v33 }
  0x26   :  { %491 = vmatpush.bf16.msrb.mxu1 %v1519_v11 }
  0x28   :  { %1445 = vmatmul.msk.bf16.gmra.mxu0 %vm122_vm0, %v79_v53  ;;  %1447 = vmatmul.msk.bf16.gmra.mxu1 %vm122_vm0, %v79_v53  ;;  %v1523_v53 = vor.u32 %v1705_v50, %v1522_v46  ;;  %v1554_v46 = vld [vmem:[%s2618_s1 + $0x110] sm:$0xf] }
  0x29   :  { %470 = vmatpush.bf16.msrb.mxu0 %v1471_v38  ;;  %433 = vmatpush.bf16.msra.mxu2 %v1459_v49 }
  0x2a   :  { %452 = vmatpush.bf16.msra.mxu3 %v1523_v53 }
  0x2d   :  { %471 = vmatpush.bf16.msrb.mxu0 %v1463_v54  ;;  %434 = vmatpush.bf16.msra.mxu2 %v1451_v63 }
  0x2e   :  { %453 = vmatpush.bf16.msra.mxu3 %v1515_v6  ;;  %v1716_v6 = vld [vmem:[%s2618_s1 + $0x134] sm:$0xf0] }
  0x31   :  { %472 = vmatpush.bf16.msrb.mxu0 %v1455_v7 }
  0x95   :  { %v138_v42 = vpop.f32.mrf.mxu0  ;;  %v157_v43 = vpop.f32.mrf.mxu1 }
  0x96   :  { %v2088_v47 = vadd.f32 %v138_v42, %v2049_v27  ;;  %v2091_v48 = vadd.f32 %v157_v43, %v2052_v28 }
  0x98   :  { %v2112_v58 = vmul.f32 0.5, %v2088_v47  ;;  %v2115_v59 = vmul.f32 0.5, %v2091_v48 }
  0x9a   :  { %v183_v3 = vmin.f32 %v2112_v58, 14.0  ;;  %v184_v4 = vmin.f32 %v2115_v59, 14.0  ;;  %vm175_vm3 = vcmp.gt.f32.partialorder %v2112_v58, 14.0  ;;  %vm176_vm7 = vcmp.gt.f32.partialorder %v2115_v59, 14.0 }
  0x9c   :  { %v191_v9 = vmul.f32 1.442695, %v183_v3  ;;  %v193_v10 = vmul.f32 1.442695, %v184_v4 }
  0x9d   :  { %v140_v12 = vpop.f32.mrf.mxu0  ;;  %v159_v13 = vpop.f32.mrf.mxu1 }
  0x9e   :  { %1758 = vpow2.f32 %v191_v9  ;;  %v2141_v16 = vadd.f32 %v140_v12, %v2049_v27  ;;  %v2144_v17 = vadd.f32 %v159_v13, %v2052_v28 }
  0x9f   :  { %1760 = vpow2.f32 %v193_v10 }
  0xa0   :  { %v2147_v18 = vmul.f32 0.5, %v2141_v16  ;;  %v2150_v19 = vmul.f32 0.5, %v2144_v17 }
  0xa2   :  { %v185_v20 = vmin.f32 %v2147_v18, 14.0  ;;  %v186_v21 = vmin.f32 %v2150_v19, 14.0  ;;  %vm177_vm4 = vcmp.gt.f32.partialorder %v2147_v18, 14.0  ;;  %vm178_vm8 = vcmp.gt.f32.partialorder %v2150_v19, 14.0  ;;  %v1550_v19 = vld [vmem:[%s2618_s1 + $0x100] sm:$0xf] }
  0xa4   :  { %v1759_v22 = vpop.eup %1758  ;;  %v195_v23 = vmul.f32 1.442695, %v185_v20  ;;  %v197_v24 = vmul.f32 1.442695, %v186_v21 }
  0xa5   :  { %v1761_v25 = vpop.eup %1760  ;;  %v143_v26 = vpop.f32.mrf.mxu0  ;;  %v207_v30 = vadd.f32 1.0, %v1759_v22  ;;  %v210_v31 = vmul.f32 -0.5, %v1759_v22  ;;  %v213_v38 = vand.u32 2147483647, %v1759_v22 }
  0xa6   :  { %v162_v29 = vpop.f32.mrf.mxu1  ;;  %1762 = vpow2.f32 %v195_v23  ;;  %v2155_v32 = vadd.f32 %v143_v26, %v2049_v27  ;;  %v216_v34 = vadd.f32 1.0, %v1761_v25  ;;  %v219_v35 = vmul.f32 -0.5, %v1761_v25 }
  0xa7   :  { %v2158_v33 = vadd.f32 %v162_v29, %v2052_v28  ;;  %1764 = vpow2.f32 %v197_v24  ;;  %v211_v39 = vadd.f32 1.0, %v210_v31  ;;  %vm2168_vm1 = vcmp.lt.f32.partialorder %v213_v38, 0.0004427343 }
  0xa8   :  { %v2161_v36 = vmul.f32 0.5, %v2155_v32  ;;  %1766 = vlog2.f32 %v207_v30  ;;  %v220_v42 = vadd.f32 1.0, %v219_v35  ;;  %v222_v55 = vand.u32 2147483647, %v1761_v25  ;;  %v1558_v35 = vld [vmem:[%s2618_s1 + $0x120] sm:$0xf] }
  0xa9   :  { %v2164_v37 = vmul.f32 0.5, %v2158_v33  ;;  %1768 = vlog2.f32 %v216_v34  ;;  %v212_v52 = vmul.f32 %v1759_v22, %v211_v39  ;;  %v2200_v23 = vor.u32 %v1716_v6, %v1562_v5  ;;  %v1713_v6 = vld [vmem:[%s2618_s1 + $0x104] sm:$0xf0] }
  0xaa   :  { %v187_v40 = vmin.f32 %v2161_v36, 14.0  ;;  %v221_v0 = vmul.f32 %v1761_v25, %v220_v42  ;;  %vm2194_vm2 = vcmp.lt.f32.partialorder %v222_v55, 0.0004427343  ;;  %v1715_v42 = vld [vmem:[%s2618_s1 + $0x124] sm:$0xf0]  ;;  %vm179_vm12 = vcmp.gt.f32.partialorder %v2161_v36, 14.0 }
  0xab   :  { %v188_v41 = vmin.f32 %v2164_v37, 14.0  ;;  %563 = vmatpush.bf16.msrb.mxu3 %v2200_v23  ;;  %vm180_vm15 = vcmp.gt.f32.partialorder %v2164_v37, 14.0  ;;  %v2277_v37 = vld [vmem:[%s2617_s0 + $0x10] sm:$0xff]  ;;  %659 = vrot.lane.b32.xlu0 %v2200_v23, %s1867_s18  ;;  %v299_v23 = vperm.slane %v2017_v14, 1 }
  0xac   :  { %v1763_v43 = vpop.eup %1762  ;;  %v199_v44 = vmul.f32 1.442695, %v187_v40 }
  0xad   :  { %v201_v45 = vmul.f32 1.442695, %v188_v41  ;;  %v1765_v49 = vpop.eup %1764  ;;  %v145_v50 = vpop.f32.mrf.mxu0  ;;  %v225_v53 = vadd.f32 1.0, %v1763_v43  ;;  %v228_v54 = vmul.f32 -0.5, %v1763_v43  ;;  %v231_v9 = vand.u32 2147483647, %v1763_v43 }
  0xae   :  { %v164_v51 = vpop.f32.mrf.mxu1  ;;  %v1767_v56 = vpop.eup %1766  ;;  %1770 = vpow2.f32 %v199_v44  ;;  %v2173_v57 = vadd.f32 %v145_v50, %v2049_v27  ;;  %v234_v61 = vadd.f32 1.0, %v1765_v49  ;;  %v240_v26 = vand.u32 2147483647, %v1765_v49 }
  0xaf   :  { %v2176_v60 = vadd.f32 %v164_v51, %v2052_v28  ;;  %v1769_v62 = vpop.eup %1768  ;;  %1772 = vpow2.f32 %v201_v45  ;;  %v209_v63 = vmul.f32 0.6931472, %v1767_v56  ;;  %v229_v4 = vadd.f32 1.0, %v228_v54 }
  0xb0   :  { %v2179_v1 = vmul.f32 0.5, %v2173_v57  ;;  %1774 = vlog2.f32 %v225_v53  ;;  %v218_v3 = vmul.f32 0.6931472, %v1769_v62  ;;  %v237_v28 = vmul.f32 -0.5, %v1765_v49 }
  0xb1   :  { %v2182_v2 = vmul.f32 0.5, %v2176_v60  ;;  %v215_v27 = vsel %vm2168_vm1, %v212_v52, %v209_v63  ;;  %1776 = vlog2.f32 %v234_v61  ;;  %v230_v25 = vmul.f32 %v1763_v43, %v229_v4  ;;  %v1714_v52 = vld [vmem:[%s2618_s1 + $0x114] sm:$0xf0] }
  0xb2   :  { %v189_v7 = vmin.f32 %v2179_v1, 14.0  ;;  %v279_v11 = vmul.f32 2.0, %v215_v27  ;;  %v224_v12 = vsel %vm2194_vm2, %v221_v0, %v218_v3  ;;  %v238_v22 = vadd.f32 1.0, %v237_v28 }
  0xb3   :  { %v190_v8 = vmin.f32 %v2182_v2, 14.0  ;;  %vm2206_vm5 = vcmp.lt.f32.partialorder %v231_v9, 0.0004427343  ;;  %v280_v40 = vmul.f32 2.0, %v224_v12  ;;  %vm241_vm6 = vcmp.lt.f32.partialorder %v240_v26, 0.0004427343 }
  0xb4   :  { %v1771_v13 = vpop.eup %1770  ;;  %v203_v20 = vmul.f32 1.442695, %v189_v7  ;;  %v287_v43 = vsel %vm175_vm3, %v2088_v47, %v279_v11  ;;  %v239_v45 = vmul.f32 %v1765_v49, %v238_v22  ;;  %v2229_v54 = vor.u32 %v1715_v42, %v1558_v35 }
  0xb5   :  { %v205_v21 = vmul.f32 1.442695, %v190_v8  ;;  %v2202_v24 = vpop.eup %1772  ;;  %v243_v29 = vadd.f32 1.0, %v1771_v13  ;;  %v246_v34 = vmul.f32 -0.5, %v1771_v13  ;;  %v249_v51 = vand.u32 2147483647, %v1771_v13 }
  0xb6   :  { %v1775_v30 = vpop.eup %1774  ;;  %1778 = vpow2.f32 %v203_v20  ;;  %v252_v41 = vadd.f32 1.0, %v2202_v24  ;;  %v255_v55 = vmul.f32 -0.5, %v2202_v24  ;;  %v288_v62 = vsel %vm176_vm7, %v2091_v48, %v280_v40  ;;  %564 = vmatpush.bf16.msrb.mxu3 %v2229_v54  ;;  %657 = vrot.lane.b32.xlu0 %v2229_v54, %s1867_s18 }
  0xb7   :  { %v1777_v38 = vpop.eup %1776  ;;  %1780 = vpow2.f32 %v205_v21  ;;  %v227_v39 = vmul.f32 0.6931472, %v1775_v30  ;;  %v247_v47 = vadd.f32 1.0, %v246_v34  ;;  %v2239_v63 = vor.u32 %v1714_v52, %v1554_v46 }
  0xb8   :  { %v236_v44 = vmul.f32 0.6931472, %v1777_v38  ;;  %1782 = vlog2.f32 %v243_v29  ;;  %vm2245_vm9 = vcmp.lt.f32.partialorder %v249_v51, 0.0004427343  ;;  %v256_v8 = vadd.f32 1.0, %v255_v55 }
  0xb9   :  { %v233_v50 = vsel %vm2206_vm5, %v230_v25, %v227_v39  ;;  %1784 = vlog2.f32 %v252_v41  ;;  %v248_v18 = vmul.f32 %v1771_v13, %v247_v47  ;;  %v258_v11 = vand.u32 2147483647, %v2202_v24  ;;  %655 = vrot.lane.b32.xlu1 %v2239_v63, %s1867_s18 }
  0xba   :  { %v281_v53 = vmul.f32 2.0, %v233_v50  ;;  %v242_v58 = vsel %vm241_vm6, %v239_v45, %v236_v44  ;;  %565 = vmatpush.bf16.msrb.mxu3 %v2239_v63  ;;  %v1551_v20 = vor.u32 %v1713_v6, %v1550_v19  ;;  %v257_v22 = vmul.f32 %v2202_v24, %v256_v8 }
  0xbb   :  { %v282_v49 = vmul.f32 2.0, %v242_v58  ;;  %vm259_vm10 = vcmp.lt.f32.partialorder %v258_v11, 0.0004427343  ;;  %vm181_vm13 = vcmp.gt.f32.partialorder %v2179_v1, 14.0  ;;  %vm182_vm1 = vcmp.gt.f32.partialorder %v2182_v2, 14.0 }
  0xbc   :  { %v1779_v56 = vpop.eup %1778  ;;  %v289_v61 = vsel %vm177_vm4, %v2141_v16, %v281_v53  ;;  %v300_v63 = vperm.slane %v2022_v15, 1  ;;  %vm584_vm2 = vcmask 130048   ;;  %vm633_vm3 = vcmask 261120  }
  0xbd   :  { %v1781_v0 = vpop.eup %1780  ;;  %v295_v3 = vpack.c.bf16 %v289_v61, %v287_v43  ;;  %v290_v59 = vsel %vm178_vm8, %v2144_v17, %v282_v49  ;;  %v261_v27 = vadd.f32 1.0, %v1779_v56  ;;  %v264_v4 = vmul.f32 -0.5, %v1779_v56 }
  0xbe   :  { %v1783_v28 = vpop.eup %1782  ;;  %v296_v5 = vpack.c.bf16 %v290_v59, %v288_v62  ;;  %v270_v48 = vadd.f32 1.0, %v1781_v0  ;;  %v273_v9 = vmul.f32 -0.5, %v1781_v0  ;;  %v267_v12 = vand.u32 2147483647, %v1779_v56  ;;  %566 = vmatpush.bf16.msrb.mxu3 %v1551_v20 }
  0xbf   :  { %v1785_v7 = vpop.eup %1784  ;;  %435 = vmatmul.bf16.vlgmr.msra.gmra.mxu2 %v295_v3  ;;  %473 = vmatmul.bf16.vlgmr.msrb.gmra.mxu0 %v295_v3  ;;  %v245_v17 = vmul.f32 0.6931472, %v1783_v28  ;;  %1786 = vlog2.f32 %v261_v27  ;;  %v265_v10 = vadd.f32 1.0, %v264_v4  ;;  %v276_v29 = vand.u32 2147483647, %v1781_v0 }
  0xc0   :  { %1544 = vmatmul.msk.bf16.vlgmr.msra.gmra.mxu3 %vm122_vm0, %v296_v5  ;;  %1546 = vmatmul.msk.bf16.vlgmr.msrb.gmra.mxu1 %vm122_vm0, %v296_v5  ;;  %1788 = vlog2.f32 %v270_v48  ;;  %v254_v13 = vmul.f32 0.6931472, %v1785_v7  ;;  %v274_v25 = vadd.f32 1.0, %v273_v9  ;;  %vm268_vm11 = vcmp.lt.f32.partialorder %v267_v12, 0.0004427343 }
  0xc1   :  { %v251_v21 = vsel %vm2245_vm9, %v248_v18, %v245_v17  ;;  %v266_v26 = vmul.f32 %v1779_v56, %v265_v10  ;;  %vm277_vm14 = vcmp.lt.f32.partialorder %v276_v29, 0.0004427343  ;;  %653 = vrot.lane.b32.xlu1 %v1551_v20, %s1867_s18 }
  0xc2   :  { %v283_v31 = vmul.f32 2.0, %v251_v21  ;;  %v260_v34 = vsel %vm259_vm10, %v257_v22, %v254_v13  ;;  %v275_v40 = vmul.f32 %v1781_v0, %v274_v25 }
  0xc3   :  { %v284_v24 = vmul.f32 2.0, %v260_v34  ;;  %v1567_v34 = vld [vmem:[%s2618_s1 + $0x1c0] sm:$0xf] }
  0xc4   :  { %v291_v43 = vsel %vm179_vm12, %v2155_v32, %v283_v31  ;;  %v2272_v32 = vld [vmem:[%s2617_s0] sm:$0xff] }
  0xc5   :  { %v1787_v30 = vpop.eup %1786  ;;  %v292_v50 = vsel %vm180_vm15, %v2158_v33, %v284_v24  ;;  %v531_v33 = vpack.c.bf16 %v2277_v37, %v2272_v32  ;;  %v1571_v24 = vld [vmem:[%s2618_s1 + $0x1d0] sm:$0xf] }
  0xc6   :  { %v1789_v35 = vpop.eup %1788  ;;  %v263_v38 = vmul.f32 0.6931472, %v1787_v30 }
  0xc7   :  { %v272_v39 = vmul.f32 0.6931472, %v1789_v35  ;;  %v1710_v35 = vld [vmem:[%s2618_s1 + $0x1c4] sm:$0xf0] }
  0xc8   :  { %v269_v41 = vsel %vm268_vm11, %v266_v26, %v263_v38 }
  0xc9   :  { %v285_v42 = vmul.f32 2.0, %v269_v41  ;;  %v278_v44 = vsel %vm277_vm14, %v275_v40, %v272_v39  ;;  %v2311_v41 = vor.u32 %v1710_v35, %v1567_v34 }
  0xca   :  { %v286_v45 = vmul.f32 2.0, %v278_v44 }
  0xcb   :  { %v293_v46 = vsel %vm181_vm13, %v2173_v57, %v285_v42  ;;  %v1711_v42 = vld [vmem:[%s2618_s1 + $0x1d4] sm:$0xf0] }
  0xcc   :  { %v297_v36 = vpack.c.bf16 %v293_v46, %v291_v43  ;;  %v294_v51 = vsel %vm182_vm1, %v2176_v60, %v286_v45  ;;  %v2321_v43 = vor.u32 %v1711_v42, %v1571_v24 }
  0xcd   :  { %v298_v1 = vpack.c.bf16 %v294_v51, %v292_v50 }
  0xcf   :  { %440 = vmatmul.bf16.gmra.mxu2 %v297_v36  ;;  %478 = vmatmul.bf16.gmra.mxu0 %v297_v36 }
  0xd0   :  { %1545 = vmatmul.msk.bf16.gmra.mxu3 %vm122_vm0, %v298_v1  ;;  %1547 = vmatmul.msk.bf16.gmra.mxu1 %vm122_vm0, %v298_v1 }
  0xe0   :  { %1564 = vmatmul.msk.bf16.vlgmr.msrb.gmra.mxu3 %vm122_vm0, %v531_v33 }
 0x11d   :  { %v660_v46 = vpop.permute.xlu0 %659 }
 0x11e   :  { %672 = vmatpush.bf16.msra.mxu0 %v660_v46 }
 0x128   :  { %v658_v50 = vpop.permute.xlu0 %657 }
 0x129   :  { %673 = vmatpush.bf16.msra.mxu0 %v658_v50 }
 0x12b   :  { %v656_v51 = vpop.permute.xlu1 %655 }
 0x12d   :  { %674 = vmatpush.bf16.msra.mxu0 %v656_v51 }
 0x13c   :  { %v474_v57 = vpop.f32.mrf.mxu0 }
 0x13d   :  { %v493_v60 = vpop.f32.mrf.mxu1  ;;  %v475_v9 = vadd.f32 %v474_v57, %v300_v63 }
 0x13f   :  { %v494_v21 = vadd.f32 %v493_v60, %v475_v9 }
 0x142   :  { %v436_v2 = vpop.f32.mrf.mxu2 }
 0x143   :  { %v455_v52 = vpop.f32.mrf.mxu3  ;;  %v437_v16 = vadd.f32 %v436_v2, %v299_v23 }
 0x144   :  { %v476_v53 = vpop.f32.mrf.mxu0 }
 0x145   :  { %v495_v58 = vpop.f32.mrf.mxu1  ;;  %v477_v6 = vadd.f32 %v476_v53, %v300_v63  ;;  %v456_v11 = vadd.f32 %v455_v52, %v437_v16  ;;  %v1591_v16 = vld [vmem:[%s2618_s1 + $0x124] sm:$0xf] }
 0x147   :  { %v496_v12 = vadd.f32 %v495_v58, %v477_v6  ;;  %v2299_v29 = vpack.c.bf16 %v494_v21, %v456_v11  ;;  %v1718_v11 = vld [vmem:[%s2618_s1 + $0x118] sm:$0xf0]  ;;  %v1583_v21 = vld [vmem:[%s2618_s1 + $0x104] sm:$0xf] }
 0x149   :  { %v618_v31 = vunpack.c.l.bf16 %v2299_v29 }
 0x14a   :  { %v438_v47 = vpop.f32.mrf.mxu2 }
 0x14b   :  { %v457_v49 = vpop.f32.mrf.mxu3  ;;  %v439_v19 = vadd.f32 %v438_v47, %v299_v23 }
 0x14c   :  { %v479_v55 = vpop.f32.mrf.mxu0 }
 0x14d   :  { %v498_v56 = vpop.f32.mrf.mxu1  ;;  %v480_v3 = vadd.f32 %v479_v55, %v300_v63  ;;  %v458_v10 = vadd.f32 %v457_v49, %v439_v19  ;;  %v1595_v19 = vld [vmem:[%s2618_s1 + $0x134] sm:$0xf] }
 0x14f   :  { %v499_v28 = vadd.f32 %v498_v56, %v480_v3  ;;  %v2297_v22 = vpack.c.bf16 %v496_v12, %v458_v10  ;;  %v654_v3 = vpop.permute.xlu1 %653  ;;  %v1587_v10 = vld [vmem:[%s2618_s1 + $0x114] sm:$0xf] }
 0x150   :  { %675 = vmatpush.bf16.msra.mxu0 %v654_v3  ;;  %v1588_v12 = vor.u32 %v1718_v11, %v1587_v10  ;;  %v1723_v3 = vld [vmem:[%s2618_s1 + $0x164] sm:$0xf0] }
 0x151   :  { %v619_v30 = vunpack.c.l.bf16 %v2297_v22 }
 0x152   :  { %v441_v61 = vpop.f32.mrf.mxu2 }
 0x153   :  { %v460_v62 = vpop.f32.mrf.mxu3  ;;  %v442_v0 = vadd.f32 %v441_v61, %v299_v23  ;;  %v1745_v39 = vpack.i.bf16 %v619_v30, %v618_v31 }
 0x154   :  { %v481_v54 = vpop.f32.mrf.mxu0 }
 0x155   :  { %v461_v59 = vadd.f32 %v460_v62, %v442_v0  ;;  %v482_v27 = vadd.f32 %v481_v54, %v300_v63  ;;  %v500_v48 = vpop.f32.mrf.mxu1  ;;  %v1577_v62 = vld [vmem:[%s2618_s1 + $0x1e0] sm:$0xf]  ;;  %v1712_v63 = vld [vmem:[%s2618_s1 + $0x1e4] sm:$0xf0] }
 0x156   :  { %v2331_v54 = vor.u32 %v1712_v63, %v1577_v62  ;;  %v1724_v62 = vld [vmem:[%s2618_s1 + $0x174] sm:$0xf0] }
 0x157   :  { %v2291_v7 = vpack.c.bf16 %v499_v28, %v461_v59  ;;  %v501_v17 = vadd.f32 %v500_v48, %v482_v27  ;;  %v1720_v28 = vld [vmem:[%s2618_s1 + $0x138] sm:$0xf0]  ;;  %v1719_v48 = vld [vmem:[%s2618_s1 + $0x128] sm:$0xf0] }
 0x159   :  { %v620_v13 = vunpack.c.l.bf16 %v2291_v7 }
 0x15a   :  { %v443_v4 = vpop.f32.mrf.mxu2 }
 0x15b   :  { %v444_v5 = vadd.f32 %v443_v4, %v299_v23  ;;  %v462_v18 = vpop.f32.mrf.mxu3 }
 0x15d   :  { %v463_v8 = vadd.f32 %v462_v18, %v444_v5  ;;  %v1596_v5 = vor.u32 %v1720_v28, %v1595_v19  ;;  %v2343_v18 = vperm.slane %v2017_v14, 2  ;;  %v1600_v28 = vld [vmem:[%s2618_s1 + $0x140] sm:$0xf] }
 0x15f   :  { %v2293_v15 = vpack.c.bf16 %v501_v17, %v463_v8  ;;  %746 = vmatpush.bf16.msra.mxu1 %v1596_v5  ;;  %v1592_v17 = vor.u32 %v1719_v48, %v1591_v16  ;;  %v1721_v5 = vld [vmem:[%s2618_s1 + $0x144] sm:$0xf0]  ;;  %v758_v48 = vperm.slane %v2017_v14, 3 }
 0x160   :  { %v1601_v16 = vor.u32 %v1721_v5, %v1600_v28 }
 0x161   :  { %v621_v20 = vunpack.c.l.bf16 %v2293_v15 }
 0x163   :  { %v568_v25 = vpop.f32.mrf.mxu3  ;;  %v1740_v26 = vpack.i.bf16 %v621_v20, %v620_v13  ;;  %747 = vmatpush.bf16.msra.mxu1 %v1592_v17 }
 0x165   :  { %1741 = vrot.lane.b32.xlu2 %v1740_v26, %s1867_s18 }
 0x167   :  { %748 = vmatpush.bf16.msra.mxu1 %v1588_v12 }
 0x16b   :  { %v570_v38 = vpop.f32.mrf.mxu3 }
 0x16c   :  { %v573_v40 = vpack.c.bf16 %v570_v38, %v568_v25  ;;  %v1717_v25 = vld [vmem:[%s2618_s1 + $0x108] sm:$0xf0] }
 0x16d   :  { %1746 = vrot.lane.b32.xlu2 %v1745_v39, %s1867_s18 }
 0x16e   :  { %598 = vmatpush.bf16.msrb.mxu2 %v573_v40 }
 0x171   :  { %1573 = vmatmul.msk.bf16.vlgmr.msrb.gmra.mxu2 %vm584_vm2, %v2311_v41 }
 0x181   :  { %1574 = vmatmul.msk.bf16.gmra.mxu2 %vm584_vm2, %v2321_v43 }
 0x1f4   :  { %v600_v44 = vpop.f32.mrf.mxu2 }
 0x1f5   :  { %v610_v60 = vpack.c.bf16 %v600_v44, %v600_v44 }
 0x1f7   :  { %v614_v47 = vunpack.c.l.bf16 %v610_v60 }
 0x1f9   :  { %v622_v23 = vmul.f32 %v618_v31, %v614_v47 }
 0x1fc   :  { %v602_v45 = vpop.f32.mrf.mxu2 }
 0x1fd   :  { %v611_v33 = vpack.c.bf16 %v602_v45, %v602_v45 }
 0x1ff   :  { %v615_v53 = vunpack.c.l.bf16 %v611_v33 }
 0x201   :  { %v623_v56 = vmul.f32 %v619_v30, %v615_v53  ;;  %v1584_v30 = vor.u32 %v1717_v25, %v1583_v21  ;;  %v1742_v25 = vpop.permute.xlu2 %1741 }
 0x203   :  { %v626_v0 = vpack.c.bf16 %v623_v56, %v622_v23  ;;  %749 = vmatpush.bf16.msra.mxu1 %v1584_v30  ;;  %v1612_v23 = vld [vmem:[%s2618_s1 + $0x170] sm:$0xf] }
 0x204   :  { %v605_v36 = vpop.f32.mrf.mxu2  ;;  %v1613_v63 = vor.u32 %v1724_v62, %v1612_v23  ;;  %v1629_v62 = vld [vmem:[%s2618_s1 + $0x164] sm:$0xf] }
 0x205   :  { %v612_v1 = vpack.c.bf16 %v605_v36, %v605_v36 }
 0x206   :  { %890 = vrot.lane.b32.xlu0 %v1613_v63, %s1867_s18 }
 0x207   :  { %v616_v2 = vunpack.c.l.bf16 %v612_v1 }
 0x209   :  { %v624_v49 = vmul.f32 %v620_v13, %v616_v2 }
 0x20c   :  { %v607_v57 = vpop.f32.mrf.mxu2 }
 0x20d   :  { %v613_v52 = vpack.c.bf16 %v607_v57, %v607_v57 }
 0x20e   :  { %884 = vrot.lane.b32.xlu0 %v1601_v16, %s1867_s18 }
 0x20f   :  { %v617_v58 = vunpack.c.l.bf16 %v613_v52 }
 0x211   :  { %v625_v55 = vmul.f32 %v621_v20, %v617_v58 }
 0x213   :  { %v627_v61 = vpack.c.bf16 %v625_v55, %v624_v49 }
 0x215   :  { %643 = vmatpush.bf16.msra.mxu3 %v627_v61 }
 0x219   :  { %644 = vmatpush.bf16.msra.mxu3 %v626_v0  ;;  %v1608_v0 = vld [vmem:[%s2618_s1 + $0x160] sm:$0xf] }
 0x21c   :  { %1579 = vmatmul.msk.bf16.vlgmr.msra.gmra.mxu3 %vm633_vm3, %v2331_v54 }
 0x21d   :  { %809 = vmatpush.bf16.msrb.mxu3 %v1613_v63  ;;  %v1727_v63 = vld [vmem:[%s2618_s1 + $0x168] sm:$0xf0] }
 0x29f   :  { %v646_v59 = vpop.f32.mrf.mxu3 }
 0x2a7   :  { %v648_v27 = vpop.f32.mrf.mxu3 }
 0x2a8   :  { %v651_v4 = vpack.c.bf16 %v648_v27, %v646_v59  ;;  %v1609_v59 = vor.u32 %v1723_v3, %v1608_v0  ;;  %v1604_v27 = vld [vmem:[%s2618_s1 + $0x150] sm:$0xf]  ;;  %v1630_v3 = vor.u32 %v1727_v63, %v1629_v62 }
 0x2aa   :  { %1580 = vmatmul.msk.bf16.vlgmr.msra.gmra.mxu0 %vm122_vm0, %v651_v4  ;;  %888 = vrot.lane.b32.xlu1 %v1609_v59, %s1867_s18  ;;  %v1722_v4 = vld [vmem:[%s2618_s1 + $0x154] sm:$0xf0] }
 0x2ab   :  { %810 = vmatpush.bf16.msrb.mxu3 %v1609_v59  ;;  %v1605_v19 = vor.u32 %v1722_v4, %v1604_v27  ;;  %v1625_v4 = vld [vmem:[%s2618_s1 + $0x154] sm:$0xf] }
 0x2ad   :  { %886 = vrot.lane.b32.xlu2 %v1605_v19, %s1867_s18 }
 0x2af   :  { %811 = vmatpush.bf16.msrb.mxu3 %v1605_v19  ;;  %v1726_v19 = vld [vmem:[%s2618_s1 + $0x158] sm:$0xf0] }
 0x2b0   :  { %v1626_v28 = vor.u32 %v1726_v19, %v1625_v4 }
 0x2b2   :  { %897 = vrot.lane.b32.xlu1 %v2343_v18, %s1867_s18 }
 0x2b3   :  { %812 = vmatpush.bf16.msrb.mxu3 %v1601_v16 }
 0x2b5   :  { %994 = vrot.lane.b32.xlu2 %v758_v48, %s1867_s18 }
 0x31c   :  { %v889_v21 = vpop.permute.xlu1 %888 }
 0x324   :  { %v898_v23 = vpop.permute.xlu1 %897 }
 0x327   :  { %v677_v6 = vpop.f32.mrf.mxu0 }
 0x328   :  { %v678_v8 = vadd.f32 %v677_v6, %v2343_v18 }
 0x32a   :  { %v682_v9 = vmul.f32 0.5, %v678_v8 }
 0x32c   :  { %v686_v13 = vmin.f32 %v682_v9, 14.0  ;;  %vm684_vm6 = vcmp.gt.f32.partialorder %v682_v9, 14.0 }
 0x32e   :  { %v688_v20 = vmul.f32 1.442695, %v686_v13 }
 0x32f   :  { %v679_v26 = vpop.f32.mrf.mxu0 }
 0x330   :  { %1790 = vpow2.f32 %v688_v20  ;;  %v680_v31 = vadd.f32 %v679_v26, %v2343_v18  ;;  %v891_v20 = vpop.permute.xlu0 %890 }
 0x331   :  { %907 = vmatpush.bf16.msra.mxu2 %v891_v20 }
 0x332   :  { %v683_v34 = vmul.f32 0.5, %v680_v31 }
 0x334   :  { %v687_v35 = vmin.f32 %v683_v34, 14.0  ;;  %vm685_vm7 = vcmp.gt.f32.partialorder %v683_v34, 14.0 }
 0x335   :  { %908 = vmatpush.bf16.msra.mxu2 %v889_v21 }
 0x336   :  { %v1791_v38 = vpop.eup %1790  ;;  %v690_v39 = vmul.f32 1.442695, %v687_v35 }
 0x337   :  { %v692_v40 = vadd.f32 1.0, %v1791_v38  ;;  %v695_v24 = vmul.f32 -0.5, %v1791_v38  ;;  %v698_v50 = vand.u32 2147483647, %v1791_v38 }
 0x338   :  { %1792 = vpow2.f32 %v690_v39 }
 0x339   :  { %1794 = vlog2.f32 %v692_v40  ;;  %v696_v46 = vadd.f32 1.0, %v695_v24  ;;  %vm699_vm4 = vcmp.lt.f32.partialorder %v698_v50, 0.0004427343  ;;  %v1747_v40 = vpop.permute.xlu2 %1746  ;;  %v1744_v24 = vunpack.i.h.bf16 %v1742_v25 }
 0x33b   :  { %v697_v1 = vmul.f32 %v1791_v38, %v696_v46  ;;  %v1749_v46 = vunpack.i.h.bf16 %v1747_v40 }
 0x33e   :  { %v1793_v42 = vpop.eup %1792 }
 0x33f   :  { %v1795_v44 = vpop.eup %1794  ;;  %v701_v45 = vadd.f32 1.0, %v1793_v42  ;;  %v704_v36 = vmul.f32 -0.5, %v1793_v42  ;;  %v707_v57 = vand.u32 2147483647, %v1793_v42 }
 0x340   :  { %v694_v51 = vmul.f32 0.6931472, %v1795_v44 }
 0x341   :  { %1796 = vlog2.f32 %v701_v45  ;;  %v705_v33 = vadd.f32 1.0, %v704_v36  ;;  %vm708_vm5 = vcmp.lt.f32.partialorder %v707_v57, 0.0004427343 }
 0x342   :  { %v700_v60 = vsel %vm699_vm4, %v697_v1, %v694_v51  ;;  %v1748_v1 = vunpack.i.l.bf16 %v1747_v40 }
 0x343   :  { %v706_v53 = vmul.f32 %v1793_v42, %v705_v33  ;;  %v710_v58 = vmul.f32 2.0, %v700_v60  ;;  %v1743_v42 = vunpack.i.l.bf16 %v1742_v25 }
 0x345   :  { %v712_v55 = vsel %vm684_vm6, %v678_v8, %v710_v58 }
 0x347   :  { %v1797_v2 = vpop.eup %1796 }
 0x348   :  { %v703_v52 = vmul.f32 0.6931472, %v1797_v2 }
 0x34a   :  { %v709_v47 = vsel %vm708_vm5, %v706_v53, %v703_v52  ;;  %v887_v52 = vpop.permute.xlu2 %886  ;;  %v885_v53 = vpop.permute.xlu0 %884 }
 0x34b   :  { %v711_v49 = vmul.f32 2.0, %v709_v47  ;;  %909 = vmatpush.bf16.msra.mxu2 %v887_v52  ;;  %v1731_v52 = vld [vmem:[%s2618_s1 + $0x1a4] sm:$0xf0] }
 0x34d   :  { %v713_v56 = vsel %vm685_vm7, %v680_v31, %v711_v49 }
 0x34e   :  { %v714_v61 = vpack.c.bf16 %v713_v56, %v712_v55  ;;  %v1633_v55 = vld [vmem:[%s2618_s1 + $0x174] sm:$0xf]  ;;  %v1728_v56 = vld [vmem:[%s2618_s1 + $0x178] sm:$0xf0] }
 0x34f   :  { %910 = vmatpush.bf16.msra.mxu2 %v885_v53 }
 0x350   :  { %1597 = vmatmul.msk.bf16.vlgmr.msra.gmra.mxu1 %vm122_vm0, %v714_v61  ;;  %v1634_v61 = vor.u32 %v1728_v56, %v1633_v55  ;;  %v1638_v55 = vld [vmem:[%s2618_s1 + $0x180] sm:$0xf]  ;;  %v1729_v56 = vld [vmem:[%s2618_s1 + $0x184] sm:$0xf0] }
 0x352   :  { %981 = vmatpush.bf16.msra.mxu3 %v1634_v61  ;;  %v1639_v61 = vor.u32 %v1729_v56, %v1638_v55  ;;  %v995_v63 = vpop.permute.xlu2 %994  ;;  %v1733_v55 = vld [vmem:[%s2618_s1 + $0x188] sm:$0xf0] }
 0x356   :  { %982 = vmatpush.bf16.msra.mxu3 %v1630_v3 }
 0x35a   :  { %983 = vmatpush.bf16.msra.mxu3 %v1626_v28 }
 0x3cd   :  { %v751_v6 = vpop.f32.mrf.mxu1 }
 0x3ce   :  { %v756_v17 = vadd.f32 %v751_v6, %v2272_v32  ;;  %v1725_v6 = vld [vmem:[%s2618_s1 + $0x148] sm:$0xf0] }
 0x3d0   :  { %v2400_v10 = vadd.f32 %v758_v48, %v756_v17 }
 0x3d5   :  { %v753_v8 = vpop.f32.mrf.mxu1 }
 0x3d6   :  { %v757_v9 = vadd.f32 %v753_v8, %v2277_v37 }
 0x3d8   :  { %v2402_v11 = vadd.f32 %v758_v48, %v757_v9  ;;  %v1621_v48 = vld [vmem:[%s2618_s1 + $0x144] sm:$0xf] }
 0x3d9   :  { %v1622_v8 = vor.u32 %v1725_v6, %v1621_v48  ;;  %v1090_v48 = vrot.slane %v2297_v22, 4 }
 0x3da   :  { %v777_v18 = vpack.c.bf16 %v2402_v11, %v2400_v10 }
 0x3db   :  { %984 = vmatpush.bf16.msra.mxu3 %v1622_v8 }
 0x3dc   :  { %1614 = vmatmul.msk.bf16.vlgmr.msrb.gmra.mxu3 %vm122_vm0, %v777_v18 }
 0x45f   :  { %v814_v12 = vpop.f32.mrf.mxu3 }
 0x467   :  { %v816_v13 = vpop.f32.mrf.mxu3 }
 0x468   :  { %v819_v14 = vpack.c.bf16 %v816_v13, %v814_v12 }
 0x46a   :  { %827 = vmatpush.bf16.msrb.mxu0 %v819_v14 }
 0x46d   :  { %1615 = vmatmul.msk.bf16.vlgmr.msrb.gmra.mxu0 %vm584_vm2, %v2311_v41 }
 0x47d   :  { %1616 = vmatmul.msk.bf16.gmra.mxu0 %vm584_vm2, %v2321_v43 }
 0x4ea   :  { %v829_v32 = vpop.f32.mrf.mxu0 }
 0x4eb   :  { %v839_v35 = vpack.c.bf16 %v829_v32, %v829_v32 }
 0x4ed   :  { %v843_v36 = vunpack.c.l.bf16 %v839_v35 }
 0x4ef   :  { %v863_v60 = vmul.f32 %v1748_v1, %v843_v36 }
 0x4f2   :  { %v831_v37 = vpop.f32.mrf.mxu0 }
 0x4f3   :  { %v840_v31 = vpack.c.bf16 %v831_v37, %v831_v37 }
 0x4f5   :  { %v844_v44 = vunpack.c.l.bf16 %v840_v31 }
 0x4f7   :  { %v864_v33 = vmul.f32 %v1749_v46, %v844_v44 }
 0x4f9   :  { %v867_v2 = vpack.c.bf16 %v864_v33, %v863_v60  ;;  %v1650_v33 = vld [vmem:[%s2618_s1 + $0x1b0] sm:$0xf] }
 0x4fa   :  { %v834_v26 = vpop.f32.mrf.mxu0 }
 0x4fb   :  { %v841_v30 = vpack.c.bf16 %v834_v26, %v834_v26 }
 0x4fd   :  { %v845_v38 = vunpack.c.l.bf16 %v841_v30 }
 0x4ff   :  { %v865_v50 = vmul.f32 %v1743_v42, %v845_v38 }
 0x502   :  { %v836_v34 = vpop.f32.mrf.mxu0 }
 0x503   :  { %v842_v39 = vpack.c.bf16 %v836_v34, %v836_v34 }
 0x505   :  { %v846_v45 = vunpack.c.l.bf16 %v842_v39 }
 0x507   :  { %v866_v51 = vmul.f32 %v1744_v24, %v846_v45 }
 0x509   :  { %v868_v57 = vpack.c.bf16 %v866_v51, %v865_v50 }
 0x50b   :  { %875 = vmatpush.bf16.msrb.mxu1 %v868_v57  ;;  %v1732_v57 = vld [vmem:[%s2618_s1 + $0x1b4] sm:$0xf0] }
 0x50c   :  { %v1651_v60 = vor.u32 %v1732_v57, %v1650_v33 }
 0x50e   :  { %1129 = vrot.lane.b32.xlu0 %v1651_v60, %s1867_s18 }
 0x50f   :  { %876 = vmatpush.bf16.msrb.mxu1 %v867_v2  ;;  %v1646_v2 = vld [vmem:[%s2618_s1 + $0x1a0] sm:$0xf] }
 0x510   :  { %v1647_v53 = vor.u32 %v1731_v52, %v1646_v2  ;;  %v1663_v2 = vld [vmem:[%s2618_s1 + $0x194] sm:$0xf]  ;;  %v1734_v52 = vld [vmem:[%s2618_s1 + $0x198] sm:$0xf0] }
 0x512   :  { %1617 = vmatmul.msk.bf16.vlgmr.msrb.gmra.mxu1 %vm633_vm3, %v2331_v54  ;;  %1127 = vrot.lane.b32.xlu1 %v1647_v53, %s1867_s18 }
 0x513   :  { %1047 = vmatpush.bf16.msra.mxu1 %v1651_v60 }
 0x516   :  { %1123 = vrot.lane.b32.xlu0 %v1639_v61, %s1867_s18 }
 0x517   :  { %1048 = vmatpush.bf16.msra.mxu1 %v1647_v53  ;;  %v1664_v53 = vor.u32 %v1734_v52, %v1663_v2  ;;  %v1247_v2 = vld [vmem:[%s2617_s0 + $0x1c0] sm:$0xff]  ;;  %v1246_v52 = vld [vmem:[%s2617_s0 + $0x1b0] sm:$0xff] }
 0x58f   :  { %v878_v58 = vpop.f32.mrf.mxu1 }
 0x597   :  { %v880_v47 = vpop.f32.mrf.mxu1 }
 0x598   :  { %v883_v49 = vpack.c.bf16 %v880_v47, %v878_v58  ;;  %v1642_v58 = vld [vmem:[%s2618_s1 + $0x190] sm:$0xf]  ;;  %v1730_v47 = vld [vmem:[%s2618_s1 + $0x194] sm:$0xf0] }
 0x59a   :  { %1618 = vmatmul.msk.bf16.vlgmr.msra.gmra.mxu2 %vm122_vm0, %v883_v49  ;;  %v1643_v49 = vor.u32 %v1730_v47, %v1642_v58 }
 0x59c   :  { %1049 = vmatpush.bf16.msra.mxu1 %v1643_v49  ;;  %1125 = vrot.lane.b32.xlu2 %v1643_v49, %s1867_s18  ;;  %v1659_v49 = vld [vmem:[%s2618_s1 + $0x184] sm:$0xf] }
 0x5a0   :  { %1050 = vmatpush.bf16.msra.mxu1 %v1639_v61  ;;  %v1660_v61 = vor.u32 %v1733_v55, %v1659_v49  ;;  %v1242_v49 = vld [vmem:[%s2617_s0 + $0x170] sm:$0xff] }
 0x61d   :  { %v912_v0 = vpop.f32.mrf.mxu2 }
 0x61e   :  { %v913_v59 = vadd.f32 %v912_v0, %v898_v23 }
 0x620   :  { %v917_v27 = vmul.f32 0.5, %v913_v59 }
 0x622   :  { %v921_v5 = vmin.f32 %v917_v27, 14.0  ;;  %vm919_vm10 = vcmp.gt.f32.partialorder %v917_v27, 14.0 }
 0x624   :  { %v923_v16 = vmul.f32 1.442695, %v921_v5 }
 0x625   :  { %v914_v17 = vpop.f32.mrf.mxu2 }
 0x626   :  { %1798 = vpow2.f32 %v923_v16  ;;  %v915_v9 = vadd.f32 %v914_v17, %v898_v23  ;;  %v1089_v16 = vrot.slane %v2299_v29, 4  ;;  %v1130_v17 = vpop.permute.xlu0 %1129  ;;  %v1092_v29 = vrot.slane %v2293_v15, 4 }
 0x627   :  { %1142 = vmatpush.bf16.msra.mxu0 %v1130_v17 }
 0x628   :  { %v918_v18 = vmul.f32 0.5, %v915_v9 }
 0x62a   :  { %v922_v12 = vmin.f32 %v918_v18, 14.0  ;;  %vm920_vm11 = vcmp.gt.f32.partialorder %v918_v18, 14.0  ;;  %v1128_v18 = vpop.permute.xlu1 %1127 }
 0x62b   :  { %1143 = vmatpush.bf16.msra.mxu0 %v1128_v18 }
 0x62c   :  { %v1799_v13 = vpop.eup %1798  ;;  %v925_v14 = vmul.f32 1.442695, %v922_v12  ;;  %v1097_v12 = vunpack.c.l.bf16 %v1089_v16 }
 0x62d   :  { %v927_v32 = vadd.f32 1.0, %v1799_v13  ;;  %v930_v37 = vmul.f32 -0.5, %v1799_v13  ;;  %v933_v31 = vand.u32 2147483647, %v1799_v13 }
 0x62e   :  { %1800 = vpow2.f32 %v925_v14  ;;  %v1098_v14 = vunpack.c.l.bf16 %v1090_v48 }
 0x62f   :  { %1802 = vlog2.f32 %v927_v32  ;;  %v931_v26 = vadd.f32 1.0, %v930_v37  ;;  %vm934_vm8 = vcmp.lt.f32.partialorder %v933_v31, 0.0004427343 }
 0x631   :  { %v932_v35 = vmul.f32 %v1799_v13, %v931_v26 }
 0x634   :  { %v1801_v20 = vpop.eup %1800 }
 0x635   :  { %v1803_v21 = vpop.eup %1802  ;;  %v936_v25 = vadd.f32 1.0, %v1801_v20  ;;  %v939_v30 = vmul.f32 -0.5, %v1801_v20  ;;  %v942_v39 = vand.u32 2147483647, %v1801_v20 }
 0x636   :  { %v929_v34 = vmul.f32 0.6931472, %v1803_v21  ;;  %v1091_v21 = vrot.slane %v2291_v7, 4 }
 0x637   :  { %1804 = vlog2.f32 %v936_v25  ;;  %v940_v38 = vadd.f32 1.0, %v939_v30  ;;  %vm943_vm9 = vcmp.lt.f32.partialorder %v942_v39, 0.0004427343 }
 0x638   :  { %v935_v40 = vsel %vm934_vm8, %v932_v35, %v929_v34  ;;  %v1099_v30 = vunpack.c.l.bf16 %v1091_v21  ;;  %v1100_v34 = vunpack.c.l.bf16 %v1092_v29 }
 0x639   :  { %v941_v44 = vmul.f32 %v1801_v20, %v940_v38  ;;  %v945_v45 = vmul.f32 2.0, %v935_v40  ;;  %v1126_v40 = vpop.permute.xlu2 %1125 }
 0x63a   :  { %1144 = vmatpush.bf16.msra.mxu0 %v1126_v40  ;;  %v1241_v40 = vld [vmem:[%s2617_s0 + $0x160] sm:$0xff] }
 0x63b   :  { %v947_v50 = vsel %vm919_vm10, %v913_v59, %v945_v45  ;;  %v1736_v45 = vld [vmem:[%s2618_s1 + $0x1b8] sm:$0xf0] }
 0x63d   :  { %v1805_v24 = vpop.eup %1804 }
 0x63e   :  { %v938_v42 = vmul.f32 0.6931472, %v1805_v24  ;;  %v1124_v24 = vpop.permute.xlu0 %1123 }
 0x63f   :  { %1145 = vmatpush.bf16.msra.mxu0 %v1124_v24  ;;  %v1255_v24 = vld [vmem:[%s2617_s0 + $0x240] sm:$0xff] }
 0x640   :  { %v944_v46 = vsel %vm943_vm9, %v941_v44, %v938_v42  ;;  %v1671_v44 = vld [vmem:[%s2618_s1 + $0x1b4] sm:$0xf] }
 0x641   :  { %v946_v36 = vmul.f32 2.0, %v944_v46  ;;  %v1672_v46 = vor.u32 %v1736_v45, %v1671_v44  ;;  %v1238_v44 = vld [vmem:[%s2617_s0 + $0x130] sm:$0xff]  ;;  %v1253_v45 = vld [vmem:[%s2617_s0 + $0x220] sm:$0xff] }
 0x643   :  { %v948_v51 = vsel %vm920_vm11, %v915_v9, %v946_v36  ;;  %1216 = vmatpush.bf16.msrb.mxu1 %v1672_v46  ;;  %v1237_v46 = vld [vmem:[%s2617_s0 + $0x120] sm:$0xff] }
 0x644   :  { %v949_v1 = vpack.c.bf16 %v948_v51, %v947_v50  ;;  %v1667_v50 = vld [vmem:[%s2618_s1 + $0x1a4] sm:$0xf]  ;;  %v1735_v51 = vld [vmem:[%s2618_s1 + $0x1a8] sm:$0xf0] }
 0x645   :  { %v1668_v33 = vor.u32 %v1735_v51, %v1667_v50  ;;  %v1251_v50 = vld [vmem:[%s2617_s0 + $0x200] sm:$0xff] }
 0x646   :  { %1635 = vmatmul.msk.bf16.vlgmr.msra.gmra.mxu3 %vm122_vm0, %v949_v1  ;;  %v1235_v51 = vld [vmem:[%s2617_s0 + $0x100] sm:$0xff] }
 0x647   :  { %1217 = vmatpush.bf16.msrb.mxu1 %v1668_v33  ;;  %v1234_v33 = vld [vmem:[%s2617_s0 + $0xf0] sm:$0xff] }
 0x64b   :  { %1218 = vmatpush.bf16.msrb.mxu1 %v1664_v53  ;;  %v1245_v53 = vld [vmem:[%s2617_s0 + $0x1a0] sm:$0xff] }
 0x64f   :  { %1219 = vmatpush.bf16.msrb.mxu1 %v1660_v61 }
 0x6c9   :  { %v986_v23 = vpop.f32.mrf.mxu3 }
 0x6ca   :  { %v991_v62 = vadd.f32 %v986_v23, %v2400_v10 }
 0x6cc   :  { %v2469_v59 = vadd.f32 %v995_v63, %v991_v62 }
 0x6d1   :  { %v988_v0 = vpop.f32.mrf.mxu3 }
 0x6d2   :  { %v992_v3 = vadd.f32 %v988_v0, %v2402_v11 }
 0x6d4   :  { %v2471_v27 = vadd.f32 %v995_v63, %v992_v3 }
 0x6d6   :  { %v1015_v4 = vpack.c.bf16 %v2471_v27, %v2469_v59 }
 0x6d8   :  { %1652 = vmatmul.msk.bf16.vlgmr.msra.gmra.mxu1 %vm122_vm0, %v1015_v4 }
 0x6d9   :  { %1345 = vmatpush.msra.mxu1 %v1241_v40 }
 0x755   :  { %v1052_v19 = vpop.f32.mrf.mxu1 }
 0x75d   :  { %v1054_v28 = vpop.f32.mrf.mxu1 }
 0x75e   :  { %v1057_v5 = vpack.c.bf16 %v1054_v28, %v1052_v19 }
 0x760   :  { %1065 = vmatpush.bf16.msrb.mxu2 %v1057_v5 }
 0x763   :  { %1653 = vmatmul.msk.bf16.vlgmr.msrb.gmra.mxu2 %vm584_vm2, %v2311_v41 }
 0x773   :  { %1654 = vmatmul.msk.bf16.gmra.mxu2 %vm584_vm2, %v2321_v43 }
 0x7e6   :  { %v1067_v10 = vpop.f32.mrf.mxu2 }
 0x7e7   :  { %v1077_v11 = vpack.c.bf16 %v1067_v10, %v1067_v10 }
 0x7e9   :  { %v1081_v8 = vunpack.c.l.bf16 %v1077_v11 }
 0x7eb   :  { %v1101_v32 = vmul.f32 %v1097_v12, %v1081_v8 }
 0x7ee   :  { %v1069_v6 = vpop.f32.mrf.mxu2 }
 0x7ef   :  { %v1078_v9 = vpack.c.bf16 %v1069_v6, %v1069_v6 }
 0x7f1   :  { %v1082_v13 = vunpack.c.l.bf16 %v1078_v9 }
 0x7f3   :  { %v1102_v41 = vmul.f32 %v1098_v14, %v1082_v13 }
 0x7f5   :  { %v1105_v37 = vpack.c.bf16 %v1102_v41, %v1101_v32 }
 0x7f6   :  { %v1072_v43 = vpop.f32.mrf.mxu2 }
 0x7f7   :  { %v1079_v20 = vpack.c.bf16 %v1072_v43, %v1072_v43 }
 0x7f9   :  { %v1083_v25 = vunpack.c.l.bf16 %v1079_v20 }
 0x7fb   :  { %v1103_v35 = vmul.f32 %v1099_v30, %v1083_v25 }
 0x7fe   :  { %v1074_v22 = vpop.f32.mrf.mxu2 }
 0x7ff   :  { %v1080_v26 = vpack.c.bf16 %v1074_v22, %v1074_v22 }
 0x801   :  { %v1084_v31 = vunpack.c.l.bf16 %v1080_v26 }
 0x803   :  { %v1104_v38 = vmul.f32 %v1100_v34, %v1084_v31 }
 0x805   :  { %v1106_v39 = vpack.c.bf16 %v1104_v38, %v1103_v35  ;;  %v1233_v35 = vld [vmem:[%s2617_s0 + $0xe0] sm:$0xff] }
 0x806   :  { %v1231_v38 = vld [vmem:[%s2617_s0 + $0xc0] sm:$0xff] }
 0x807   :  { %1113 = vmatpush.bf16.msrb.mxu3 %v1106_v39  ;;  %v1256_v39 = vld [vmem:[%s2617_s0 + $0x250] sm:$0xff] }
 0x80b   :  { %1114 = vmatpush.bf16.msrb.mxu3 %v1105_v37 }
 0x80e   :  { %1655 = vmatmul.msk.bf16.vlgmr.msrb.gmra.mxu3 %vm633_vm3, %v2331_v54  ;;  %v2496_v54 = vld [vmem:[%s2617_s0 + $0xa8] sm:$0xf] }
 0x80f   :  { %v1122_v36 = vperm.slane %v2496_v54, 2  ;;  %v1228_v26 = vperm.slane %v2496_v54, 3  ;;  %v1252_v54 = vld [vmem:[%s2617_s0 + $0x210] sm:$0xff] }
 0x891   :  { %v1116_v7 = vpop.f32.mrf.mxu3 }
 0x899   :  { %v1118_v15 = vpop.f32.mrf.mxu3 }
 0x89a   :  { %v1121_v42 = vpack.c.bf16 %v1118_v15, %v1116_v7  ;;  %v1240_v7 = vld [vmem:[%s2617_s0 + $0x150] sm:$0xff]  ;;  %v1239_v15 = vld [vmem:[%s2617_s0 + $0x140] sm:$0xff] }
 0x89b   :  { %1346 = vmatpush.msra.mxu1 %v1240_v7 }
 0x89c   :  { %1656 = vmatmul.msk.bf16.vlgmr.msra.gmra.mxu0 %vm122_vm0, %v1121_v42  ;;  %v1254_v42 = vld [vmem:[%s2617_s0 + $0x230] sm:$0xff] }
 0x89d   :  { %1347 = vmatpush.msra.mxu1 %v1239_v15 }
 0x89f   :  { %1348 = vmatpush.msra.mxu1 %v1238_v44 }
 0x8a1   :  { %1349 = vmatpush.msra.mxu1 %v1237_v46 }
 0x919   :  { %v1147_v1 = vpop.f32.mrf.mxu0 }
 0x91a   :  { %v1148_v57 = vadd.f32 %v1147_v1, %v1122_v36  ;;  %v1250_v1 = vld [vmem:[%s2617_s0 + $0x1f0] sm:$0xff] }
 0x91c   :  { %v1152_v60 = vmul.f32 0.5, %v1148_v57 }
 0x91e   :  { %v1156_v58 = vmin.f32 %v1152_v60, 14.0  ;;  %vm1154_vm14 = vcmp.gt.f32.partialorder %v1152_v60, 14.0  ;;  %v1248_v60 = vld [vmem:[%s2617_s0 + $0x1d0] sm:$0xff] }
 0x920   :  { %v1158_v47 = vmul.f32 1.442695, %v1156_v58  ;;  %v1244_v58 = vld [vmem:[%s2617_s0 + $0x190] sm:$0xff] }
 0x921   :  { %v1149_v56 = vpop.f32.mrf.mxu0 }
 0x922   :  { %1806 = vpow2.f32 %v1158_v47  ;;  %v1150_v23 = vadd.f32 %v1149_v56, %v1122_v36  ;;  %v1236_v36 = vld [vmem:[%s2617_s0 + $0x110] sm:$0xff]  ;;  %v1243_v47 = vld [vmem:[%s2617_s0 + $0x180] sm:$0xff] }
 0x923   :  { %1350 = vmatpush.msra.mxu1 %v1236_v36 }
 0x924   :  { %v1153_v62 = vmul.f32 0.5, %v1150_v23 }
 0x925   :  { %1351 = vmatpush.msra.mxu1 %v1235_v51 }
 0x926   :  { %v1157_v63 = vmin.f32 %v1153_v62, 14.0  ;;  %vm1155_vm15 = vcmp.gt.f32.partialorder %v1153_v62, 14.0 }
 0x927   :  { %1352 = vmatpush.msra.mxu1 %v1234_v33 }
 0x928   :  { %v1807_v0 = vpop.eup %1806  ;;  %v1160_v3 = vmul.f32 1.442695, %v1157_v63  ;;  %v1258_v63 = vld [vmem:[%s2617_s0 + $0xb0] sm:$0x3] }
 0x929   :  { %v1162_v4 = vadd.f32 1.0, %v1807_v0  ;;  %v1165_v19 = vmul.f32 -0.5, %v1807_v0  ;;  %v1168_v48 = vand.u32 2147483647, %v1807_v0 }
 0x92a   :  { %1808 = vpow2.f32 %v1160_v3 }
 0x92b   :  { %1810 = vlog2.f32 %v1162_v4  ;;  %v1166_v11 = vadd.f32 1.0, %v1165_v19  ;;  %vm1169_vm12 = vcmp.lt.f32.partialorder %v1168_v48, 0.0004427343  ;;  %v1358_v19 = vperm.slane %v1258_v63, 1 }
 0x92d   :  { %v1167_v17 = vmul.f32 %v1807_v0, %v1166_v11  ;;  %v1333_v0 = vperm.slane %v1258_v63, 0 }
 0x930   :  { %v1809_v28 = vpop.eup %1808 }
 0x931   :  { %v1811_v5 = vpop.eup %1810  ;;  %v1171_v10 = vadd.f32 1.0, %v1809_v28  ;;  %v1174_v16 = vmul.f32 -0.5, %v1809_v28  ;;  %v1177_v9 = vand.u32 2147483647, %v1809_v28 }
 0x932   :  { %v1164_v6 = vmul.f32 0.6931472, %v1811_v5 }
 0x933   :  { %1812 = vlog2.f32 %v1171_v10  ;;  %v1175_v8 = vadd.f32 1.0, %v1174_v16  ;;  %vm1178_vm13 = vcmp.lt.f32.partialorder %v1177_v9, 0.0004427343 }
 0x934   :  { %v1170_v18 = vsel %vm1169_vm12, %v1167_v17, %v1164_v6 }
 0x935   :  { %v1176_v14 = vmul.f32 %v1809_v28, %v1175_v8  ;;  %v1180_v32 = vmul.f32 2.0, %v1170_v18 }
 0x937   :  { %v1182_v43 = vsel %vm1154_vm14, %v1148_v57, %v1180_v32  ;;  %v1249_v57 = vld [vmem:[%s2617_s0 + $0x1e0] sm:$0xff] }
 0x939   :  { %v1813_v12 = vpop.eup %1812 }
 0x93a   :  { %v1173_v13 = vmul.f32 0.6931472, %v1813_v12 }
 0x93c   :  { %v1179_v41 = vsel %vm1178_vm13, %v1176_v14, %v1173_v13 }
 0x93d   :  { %v1181_v37 = vmul.f32 2.0, %v1179_v41 }
 0x93f   :  { %v1183_v20 = vsel %vm1155_vm15, %v1150_v23, %v1181_v37 }
 0x940   :  { %v1184_v21 = vpack.c.bf16 %v1183_v20, %v1182_v43 }
 0x942   :  { %1673 = vmatmul.msk.bf16.vlgmr.msrb.gmra.mxu1 %vm122_vm0, %v1184_v21 }
 0x9bf   :  { %v1221_v29 = vpop.f32.mrf.mxu1 }
 0x9c0   :  { %v1226_v25 = vadd.f32 %v1221_v29, %v2469_v59  ;;  %v1232_v59 = vld [vmem:[%s2617_s0 + $0xd0] sm:$0xff] }
 0x9c2   :  { %v1229_v34 = vadd.f32 %v1228_v26, %v1226_v25 }
 0x9c7   :  { %v1223_v22 = vpop.f32.mrf.mxu1 }
 0x9c8   :  { %v1227_v30 = vadd.f32 %v1223_v22, %v2471_v27  ;;  %v1257_v27 = vld [vmem:[%s2617_s0 + $0x260] sm:$0xff]  ;;  %s1398_s0 = sshll.u32 %s2620_s3, 4  ;;  %s1399_s0 = int_to_ptr.hbm [resolvable:$true] %s1398_s0 }
 0x9c9   :  { %1359 = vmatpush.msra.mxu2 %v1257_v27 }
 0x9ca   :  { %v1230_v31 = vadd.f32 %v1228_v26, %v1227_v30 }
 0x9cb   :  { %1360 = vmatpush.msra.mxu2 %v1256_v39 }
 0x9cc   :  { %1276 = vmatpush.msra.mxu3 %v1230_v31  ;;  %1322 = vmatpush.msrb.mxu0 %v1230_v31 }
 0x9cd   :  { %1361 = vmatpush.msra.mxu2 %v1255_v24 }
 0x9ce   :  { %1277 = vmatpush.msra.mxu3 %v1229_v34  ;;  %1323 = vmatpush.msrb.mxu0 %v1229_v34 }
 0x9cf   :  { %1676 = vmatmul.msk.f32.vlgmr.msrb.gmra.mxu0 %vm584_vm2, %v1233_v35  ;;  %1674 = vmatmul.msk.f32.vlgmr.msra.gmra.mxu3 %vm584_vm2, %v1231_v38 }
 0x9d0   :  { %1299 = vmatpush.msrb.mxu3 %v1230_v31  ;;  %1362 = vmatpush.msra.mxu2 %v1254_v42 }
 0x9d2   :  { %1300 = vmatpush.msrb.mxu3 %v1229_v34  ;;  %1363 = vmatpush.msra.mxu2 %v1253_v45 }
 0x9d4   :  { %1364 = vmatpush.msra.mxu2 %v1252_v54 }
 0x9d6   :  { %1365 = vmatpush.msra.mxu2 %v1251_v50 }
 0x9d7   :  { %1675 = vmatmul.msk.f32.vlgmr.msrb.gmra.mxu3 %vm584_vm2, %v1232_v59 }
 0x9d8   :  { %1366 = vmatpush.msra.mxu2 %v1250_v1 }
 0x9da   :  { %1367 = vmatpush.msra.mxu2 %v1249_v57 }
 0x9dc   :  { %1368 = vmatpush.msra.mxu2 %v1248_v60 }
 0x9de   :  { %1369 = vmatpush.msra.mxu2 %v1247_v2 }
 0x9e0   :  { %1370 = vmatpush.msra.mxu2 %v1246_v52 }
 0x9e2   :  { %1371 = vmatpush.msra.mxu2 %v1245_v53 }
 0x9e4   :  { %1372 = vmatpush.msra.mxu2 %v1244_v58 }
 0x9e6   :  { %1373 = vmatpush.msra.mxu2 %v1243_v47 }
 0x9e8   :  { %1374 = vmatpush.msra.mxu2 %v1242_v49 }
 0xa4c   :  { %v1325_v55 = vpop.f32.mrf.mxu0 }
 0xa4d   :  { %1329 = vrot.lane.b32.xlu1 %v1325_v55, %s1867_s18  ;;  %s1869_s18 = smov [#allocation4]  }
 0xa4e   :  { %s1396_s14 = sshll.u32 %s1869_s18, 4  ;;  %s1397_s14 = int_to_ptr.vmem [resolvable:$true] %s1396_s14 }
 0xa52   :  { %v1279_v56 = vpop.f32.mrf.mxu3 }
 0xa53   :  { %1677 = vmatmul.msk.f32.vlgmr.msra.gmra.mxu1 %vm122_vm0, %v1279_v56 }
 0xa5a   :  { %v1302_v61 = vpop.f32.mrf.mxu3 }
 0xabf   :  { %v1330_v23 = vpop.permute.xlu1 %1329 }
 0xac0   :  { %v1332_v62 = vsel %vm122_vm0, %v1302_v61, %v1330_v23 }
 0xac1   :  { %1375 = vmatmul.f32.vlgmr.msra.gmra.mxu2 %v1332_v62 }
 0xad0   :  { %v1354_v3 = vpop.f32.mrf.mxu1 }
 0xad1   :  { %v1355_v4 = vadd.f32 %v1354_v3, %v1333_v0 }
 0xad3   :  { %1357 = vst [vmem:[#allocation2] sm:$0xff] %v1355_v4 }
 0xad4   :  { %1390 = dma.vmem_to_hbm [thread:$0]  %s1386_s10, 128, %s1388_s13, [#allocation3]  }
 0xb44   :  { %v1376_v28 = vpop.f32.mrf.mxu2 }
 0xb45   :  { %v1377_v5 = vadd.f32 %v1376_v28, %v1358_v19 }
 0xb47   :  { %1379 = vst [vmem:[#allocation4] sm:$0xff] %v1377_v5 }
 0xb48   :  { %1401 = dma.vmem_to_hbm [thread:$0]  %s1397_s14, 128, %s1399_s0, [#allocation5]  }
 0xb49   :  { %1863 = dma.done.wait [#allocation3], 128  }
 0xb4a   :  { %1864 = vsyncadd [#allocation3], 4294967168 }
 0xb4b   :  { %1865 = dma.done.wait [#allocation5], 128  }
 0xb4c   :  { %1866 = vsyncadd [#allocation5], 4294967168 }
 0xb4d   :  { %1410 = vsyncpa [#allocation3], 1 }
 0xb4e   :  { %1411 = vsyncpa [#allocation5], 1 }

</bundles_post_ra>
